<compile_context>
chip_gen: v6e
topology: v6e:2x2x1
jax: 0.10.0
libtpu: 0.0.40
codegen_flags: <defaults>
</compile_context>

<pallas_src>
import numpy as np
import jax
import jax.numpy as jnp
from jax.experimental import pallas as pl
from jax.experimental.pallas import tpu as pltpu

# ---- problem sizes (small, consistent with the module's forward) ----
INPUT_SIZE = 16
HIDDEN_SIZE = 32
ACTION_SIZE = 4
OUTPUT_SIZE = 4
BATCH = 2
SEQ = 8

B_PAD = 8            # pad batch to a full sublane group
PACK_LANES = 128     # parameter slab lane width

# ------------------------------------------------------------------ #
# Parameter slab layout (static): name -> (row_start, n_rows, n_cols)
# All weights are pre-transposed to (in_features, out_features); LSTM biases summed.
# ------------------------------------------------------------------ #
_PARAM_SPECS = [
    ("wih0", INPUT_SIZE, 4 * HIDDEN_SIZE),
    ("whh0", HIDDEN_SIZE, 4 * HIDDEN_SIZE),
    ("b0", 1, 4 * HIDDEN_SIZE),
    ("wih1", HIDDEN_SIZE, 4 * HIDDEN_SIZE),
    ("whh1", HIDDEN_SIZE, 4 * HIDDEN_SIZE),
    ("b1", 1, 4 * HIDDEN_SIZE),
    ("mu1_wh", HIDDEN_SIZE, 64), ("mu1_wa", ACTION_SIZE, 64), ("mu1_b", 1, 64),
    ("mu2_w", 64, 32), ("mu2_b", 1, 32),
    ("mu3_w", 32, 16), ("mu3_b", 1, 16),
    ("mu4_w", 16, OUTPUT_SIZE), ("mu4_b", 1, OUTPUT_SIZE),
    ("sm1_wh", HIDDEN_SIZE, 64), ("sm1_wa", ACTION_SIZE, 64), ("sm1_b", 1, 64),
    ("sm2_w", 64, OUTPUT_SIZE * OUTPUT_SIZE), ("sm2_b", 1, OUTPUT_SIZE * OUTPUT_SIZE),
    ("sv1_wh", HIDDEN_SIZE, 64), ("sv1_wa", ACTION_SIZE, 64), ("sv1_b", 1, 64),
    ("sv2_w", 64, 32), ("sv2_b", 1, 32),
    ("sv3_w", 32, 16), ("sv3_b", 1, 16),
    ("sv4_w", 16, OUTPUT_SIZE), ("sv4_b", 1, OUTPUT_SIZE),
]

_PARAM_OFFSETS = {}
_row = 0
for _name, _r, _c in _PARAM_SPECS:
    _PARAM_OFFSETS[_name] = (_row, _r, _c)
    _row += _r
    _row = -(-_row // 8) * 8  # sublane-align the next parameter's row start
_PACKED_ROWS = _row           # 616 rows x 128 lanes x f32 ~ 308 KiB


def _leaky_relu(x, slope=0.01):  # PyTorch F.leaky_relu default negative_slope
    return jnp.where(x > 0, x, slope * x)


# ------------------------------------------------------------------ #
# Kernel
# ------------------------------------------------------------------ #
def lstm_dist_kernel(x_ref, a_ref, p_ref, out_ref):
    H = HIDDEN_SIZE
    O = OUTPUT_SIZE
    B = a_ref.shape[0]            # padded batch (8)
    T = x_ref.shape[0] // B       # sequence length (static)

    def p(name):
        r0, nr, nc = _PARAM_OFFSETS[name]
        return p_ref[r0:r0 + nr, 0:nc]

    # ---- hoist LSTM weights out of the recurrence (loaded once) ----
    wih0 = p("wih0")
    whh0 = p("whh0")
    b0 = p("b0")
    wih1 = p("wih1")
    whh1 = p("whh1")
    b1 = p("b1")

    # ---- layer-0 input projection hoisted out of the loop: one well-shaped matmul ----
    # x_ref is (T*B, INPUT_SIZE), time-major.
    xproj = jnp.dot(x_ref[...], wih0, preferred_element_type=jnp.float32) + b0  # (T*B, 4H)

    def gates_to_hc(gates, c):
        # one sigmoid + one tanh over the full (B, 4H) vreg, then lane slices (i,f,g,o order)
        sig = jax.nn.sigmoid(gates)
        th = jnp.tanh(gates)
        i = sig[:, 0 * H:1 * H]
        f = sig[:, 1 * H:2 * H]
        g = th[:, 2 * H:3 * H]
        o = sig[:, 3 * H:4 * H]
        c_new = f * c + i * g
        h_new = o * jnp.tanh(c_new)
        return h_new, c_new

    zeros = jnp.zeros((B, H), jnp.float32)
    h0, c0, h1, c1 = zeros, zeros, zeros, zeros

    # ---- statically unrolled recurrence; state carried in registers ----
    for t in range(T):
        g0 = xproj[t * B:(t + 1) * B, :] + jnp.dot(h0, whh0, preferred_element_type=jnp.float32)
        h0, c0 = gates_to_hc(g0, c0)
        g1 = (jnp.dot(h0, wih1, preferred_element_type=jnp.float32)
              + jnp.dot(h1, whh1, preferred_element_type=jnp.float32)
              + b1)
        h1, c1 = gates_to_hc(g1, c1)

    h_last = h1          # lstm_out[:, -1, :]  -> (B, H)
    a = a_ref[...]       # action_state        -> (B, A)

    # concat([h_last, a], 1) @ W + b  realized as two matmuls (no in-kernel lane concat)
    def lin_cat(wh_name, wa_name, b_name):
        return (jnp.dot(h_last, p(wh_name), preferred_element_type=jnp.float32)
                + jnp.dot(a, p(wa_name), preferred_element_type=jnp.float32)
                + p(b_name))

    def lin(x, w_name, b_name):
        return jnp.dot(x, p(w_name), preferred_element_type=jnp.float32) + p(b_name)

    # ---- mu head: 3x leaky_relu MLP + softmax ----
    mu = _leaky_relu(lin_cat("mu1_wh", "mu1_wa", "mu1_b"))
    mu = _leaky_relu(lin(mu, "mu2_w", "mu2_b"))
    mu = _leaky_relu(lin(mu, "mu3_w", "mu3_b"))
    logits = lin(mu, "mu4_w", "mu4_b")
    logits = logits - jnp.max(logits, axis=1, keepdims=True)
    e = jnp.exp(logits)
    mu_p = e * pl.reciprocal(jnp.sum(e, axis=1, keepdims=True), approx=True)

    # ---- sigma_matrix head: leaky_relu -> linear -> tanh ----
    sm = _leaky_relu(lin_cat("sm1_wh", "sm1_wa", "sm1_b"))
    sm = jnp.tanh(lin(sm, "sm2_w", "sm2_b"))

    # ---- sigma_vector head: 3x leaky_relu MLP -> exp ----
    sv = _leaky_relu(lin_cat("sv1_wh", "sv1_wa", "sv1_b"))
    sv = _leaky_relu(lin(sv, "sv2_w", "sv2_b"))
    sv = _leaky_relu(lin(sv, "sv3_w", "sv3_b"))
    sv = jnp.exp(lin(sv, "sv4_w", "sv4_b"))

    # ---- single merged output ref: lanes [0:O]=mu, [O:O+O*O]=sigma_matrix, next O=sigma_vector ----
    out_ref[...] = jnp.zeros_like(out_ref)
    out_ref[:, 0:O] = mu_p
    out_ref[:, O:O + O * O] = sm
    out_ref[:, O + O * O:2 * O + O * O] = sv


# ------------------------------------------------------------------ #
# Parameter generation + packing (PyTorch-default uniform init)
# ------------------------------------------------------------------ #
def init_packed_params(key):
    H, Din, A, O = HIDDEN_SIZE, INPUT_SIZE, ACTION_SIZE, OUTPUT_SIZE
    keys = iter(jax.random.split(key, 64))

    def unif(shape, bound):
        return jax.random.uniform(next(keys), shape, jnp.float32, -bound, bound)

    kH = H ** -0.5
    # LSTM layer 0 / layer 1 (PyTorch shapes: (4H, in), (4H, H), (4H,))
    wih0 = unif((4 * H, Din), kH); whh0 = unif((4 * H, H), kH)
    bih0 = unif((4 * H,), kH); bhh0 = unif((4 * H,), kH)
    wih1 = unif((4 * H, H), kH); whh1 = unif((4 * H, H), kH)
    bih1 = unif((4 * H,), kH); bhh1 = unif((4 * H,), kH)

    def linear(din, dout):
        b = din ** -0.5
        return unif((dout, din), b), unif((dout,), b)   # PyTorch (out, in) weight

    mu1 = linear(H + A, 64); mu2 = linear(64, 32); mu3 = linear(32, 16); mu4 = linear(16, O)
    sm1 = linear(H + A, 64); sm2 = linear(64, O * O)
    sv1 = linear(H + A, 64); sv2 = linear(64, 32); sv3 = linear(32, 16); sv4 = linear(16, O)

    named = {
        "wih0": wih0.T, "whh0": whh0.T, "b0": (bih0 + bhh0).reshape(1, -1),
        "wih1": wih1.T, "whh1": whh1.T, "b1": (bih1 + bhh1).reshape(1, -1),
    }

    def add_cat(prefix, wb):
        w, b = wb
        wt = w.T                         # (H+A, out)
        named[prefix + "_wh"] = wt[:H]
        named[prefix + "_wa"] = wt[H:]
        named[prefix + "_b"] = b.reshape(1, -1)

    def add(prefix, wb):
        w, b = wb
        named[prefix + "_w"] = w.T
        named[prefix + "_b"] = b.reshape(1, -1)

    add_cat("mu1", mu1); add("mu2", mu2); add("mu3", mu3); add("mu4", mu4)
    add_cat("sm1", sm1); add("sm2", sm2)
    add_cat("sv1", sv1); add("sv2", sv2); add("sv3", sv3); add("sv4", sv4)

    buf = np.zeros((_PACKED_ROWS, PACK_LANES), np.float32)
    for name, (r0, nr, nc) in _PARAM_OFFSETS.items():
        arr = np.asarray(named[name], np.float32)
        assert arr.shape == (nr, nc), (name, arr.shape, (nr, nc))
        buf[r0:r0 + nr, :nc] = arr
    return jnp.asarray(buf)


# ------------------------------------------------------------------ #
# Wrapper
# ------------------------------------------------------------------ #
@jax.jit
def lstm_dist_forward(env_state, action_state, packed_params):
    """env_state: (B, T, input_size) [batch_first]; action_state: (B, action_size)."""
    B, T, Din = env_state.shape
    O = OUTPUT_SIZE

    # pad batch to 8 sublanes (padded rows are zeros and discarded after the kernel)
    pad_b = B_PAD - B
    env_p = jnp.pad(env_state, ((0, pad_b), (0, 0), (0, 0)))
    act_p = jnp.pad(action_state, ((0, pad_b), (0, 0)))
    # time-major, flattened so the layer-0 input projection is one matmul
    x2d = jnp.transpose(env_p, (1, 0, 2)).reshape(T * B_PAD, Din)

    vmem = pl.BlockSpec(memory_space=pltpu.MemorySpace.VMEM)
    out = pl.pallas_call(
        lstm_dist_kernel,
        out_shape=jax.ShapeDtypeStruct((B_PAD, PACK_LANES), jnp.float32),
        in_specs=[vmem, vmem, vmem],
        out_specs=vmem,
    )(x2d, act_p, packed_params)

    mu = out[:B, 0:O]
    sigma_matrix = out[:B, O:O + O * O].reshape(B, O, O)
    sigma_vector = out[:B, O + O * O:2 * O + O * O]
    return mu, sigma_matrix, sigma_vector


if __name__ == "__main__":
    key = jax.random.PRNGKey(0)
    k_env, k_act, k_par = jax.random.split(key, 3)

    env_state = jax.random.normal(k_env, (BATCH, SEQ, INPUT_SIZE), jnp.float32)
    action_state = jax.random.normal(k_act, (BATCH, ACTION_SIZE), jnp.float32)
    packed_params = init_packed_params(k_par)

    mu, sigma_matrix, sigma_vector = lstm_dist_forward(env_state, action_state, packed_params)
    jax.block_until_ready((mu, sigma_matrix, sigma_vector))

    assert mu.shape == (BATCH, OUTPUT_SIZE)
    assert sigma_matrix.shape == (BATCH, OUTPUT_SIZE, OUTPUT_SIZE)
    assert sigma_vector.shape == (BATCH, OUTPUT_SIZE)
    assert bool(jnp.all(jnp.isfinite(mu)))
    assert bool(jnp.all(jnp.isfinite(sigma_matrix)))
    assert bool(jnp.all(jnp.isfinite(sigma_vector)))
    print("KERNEL_OK")
</pallas_src>

<mosaic_0001>
module attributes {stable_mosaic.version = 11 : i64} {
  func.func @lstm_dist_kernel(%arg0: memref<64x16xf32, #tpu.memory_space<vmem>>, %arg1: memref<8x4xf32, #tpu.memory_space<vmem>>, %arg2: memref<616x128xf32, #tpu.memory_space<vmem>>, %arg3: memref<8x128xf32, #tpu.memory_space<vmem>>) attributes {dimension_semantics = [], scalar_prefetch = 0 : i64, scratch_operands = 0 : i64, tpu.core_type = #tpu.core_type<tc>} {
    %c0 = arith.constant 0 : index
    %c0_0 = arith.constant 0 : index
    %0 = vector.load %arg2[%c0, %c0_0] : memref<616x128xf32, #tpu.memory_space<vmem>>, vector<16x128xf32>
    %c16 = arith.constant 16 : index
    %c0_1 = arith.constant 0 : index
    %1 = vector.load %arg2[%c16, %c0_1] : memref<616x128xf32, #tpu.memory_space<vmem>>, vector<32x128xf32>
    %c48 = arith.constant 48 : index
    %c0_2 = arith.constant 0 : index
    %2 = vector.load %arg2[%c48, %c0_2] : memref<616x128xf32, #tpu.memory_space<vmem>>, vector<1x128xf32>
    %c56 = arith.constant 56 : index
    %c0_3 = arith.constant 0 : index
    %3 = vector.load %arg2[%c56, %c0_3] : memref<616x128xf32, #tpu.memory_space<vmem>>, vector<32x128xf32>
    %c88 = arith.constant 88 : index
    %c0_4 = arith.constant 0 : index
    %4 = vector.load %arg2[%c88, %c0_4] : memref<616x128xf32, #tpu.memory_space<vmem>>, vector<32x128xf32>
    %c120 = arith.constant 120 : index
    %c0_5 = arith.constant 0 : index
    %5 = vector.load %arg2[%c120, %c0_5] : memref<616x128xf32, #tpu.memory_space<vmem>>, vector<1x128xf32>
    %c0_6 = arith.constant 0 : index
    %c0_7 = arith.constant 0 : index
    %6 = vector.load %arg0[%c0_6, %c0_7] : memref<64x16xf32, #tpu.memory_space<vmem>>, vector<64x16xf32>
    %cst = arith.constant dense<0.000000e+00> : vector<64x128xf32>
    %7 = tpu.matmul %6, %0, %cst {dimension_numbers = #tpu.dot_dimension_numbers<[1], [0], [0], [1], [0, 0, 1, 1], [], []>} : vector<64x16xf32>, vector<16x128xf32>, vector<64x128xf32> -> vector<64x128xf32>
    %8 = vector.broadcast %2 : vector<1x128xf32> to vector<64x128xf32>
    %9 = arith.addf %7, %8 : vector<64x128xf32>
    %cst_8 = arith.constant 0.000000e+00 : f32
    %10 = vector.broadcast %cst_8 : f32 to vector<8x32xf32>
    %11 = vector.extract_strided_slice %9 {offsets = [0, 0], sizes = [8, 128], strides = [1, 1]} : vector<64x128xf32> to vector<8x128xf32>
    %cst_9 = arith.constant dense<0.000000e+00> : vector<8x128xf32>
    %12 = tpu.matmul %10, %1, %cst_9 {dimension_numbers = #tpu.dot_dimension_numbers<[1], [0], [0], [1], [0, 0, 1, 1], [], []>} : vector<8x32xf32>, vector<32x128xf32>, vector<8x128xf32> -> vector<8x128xf32>
    %13 = arith.addf %11, %12 : vector<8x128xf32>
    %14 = arith.negf %13 : vector<8x128xf32>
    %15 = math.exp %14 : vector<8x128xf32>
    %cst_10 = arith.constant 1.000000e+00 : f32
    %16 = vector.broadcast %cst_10 : f32 to vector<8x128xf32>
    %17 = arith.addf %16, %15 : vector<8x128xf32>
    %18 = arith.divf %16, %17 : vector<8x128xf32>
    %19 = math.tanh %13 : vector<8x128xf32>
    %20 = vector.extract_strided_slice %18 {offsets = [0, 0], sizes = [8, 32], strides = [1, 1]} : vector<8x128xf32> to vector<8x32xf32>
    %21 = vector.extract_strided_slice %18 {offsets = [0, 32], sizes = [8, 32], strides = [1, 1]} : vector<8x128xf32> to vector<8x32xf32>
    %22 = vector.extract_strided_slice %19 {offsets = [0, 64], sizes = [8, 32], strides = [1, 1]} : vector<8x128xf32> to vector<8x32xf32>
    %23 = vector.extract_strided_slice %18 {offsets = [0, 96], sizes = [8, 32], strides = [1, 1]} : vector<8x128xf32> to vector<8x32xf32>
    %24 = arith.mulf %21, %10 : vector<8x32xf32>
    %25 = arith.mulf %20, %22 : vector<8x32xf32>
    %26 = arith.addf %24, %25 : vector<8x32xf32>
    %27 = math.tanh %26 : vector<8x32xf32>
    %28 = arith.mulf %23, %27 : vector<8x32xf32>
    %cst_11 = arith.constant dense<0.000000e+00> : vector<8x128xf32>
    %29 = tpu.matmul %28, %3, %cst_11 {dimension_numbers = #tpu.dot_dimension_numbers<[1], [0], [0], [1], [0, 0, 1, 1], [], []>} : vector<8x32xf32>, vector<32x128xf32>, vector<8x128xf32> -> vector<8x128xf32>
    %cst_12 = arith.constant dense<0.000000e+00> : vector<8x128xf32>
    %30 = tpu.matmul %10, %4, %cst_12 {dimension_numbers = #tpu.dot_dimension_numbers<[1], [0], [0], [1], [0, 0, 1, 1], [], []>} : vector<8x32xf32>, vector<32x128xf32>, vector<8x128xf32> -> vector<8x128xf32>
    %31 = arith.addf %29, %30 : vector<8x128xf32>
    %32 = vector.broadcast %5 : vector<1x128xf32> to vector<8x128xf32>
    %33 = arith.addf %31, %32 : vector<8x128xf32>
    %34 = arith.negf %33 : vector<8x128xf32>
    %35 = math.exp %34 : vector<8x128xf32>
    %cst_13 = arith.constant 1.000000e+00 : f32
    %36 = vector.broadcast %cst_13 : f32 to vector<8x128xf32>
    %37 = arith.addf %36, %35 : vector<8x128xf32>
    %38 = arith.divf %36, %37 : vector<8x128xf32>
    %39 = math.tanh %33 : vector<8x128xf32>
    %40 = vector.extract_strided_slice %38 {offsets = [0, 0], sizes = [8, 32], strides = [1, 1]} : vector<8x128xf32> to vector<8x32xf32>
    %41 = vector.extract_strided_slice %38 {offsets = [0, 32], sizes = [8, 32], strides = [1, 1]} : vector<8x128xf32> to vector<8x32xf32>
    %42 = vector.extract_strided_slice %39 {offsets = [0, 64], sizes = [8, 32], strides = [1, 1]} : vector<8x128xf32> to vector<8x32xf32>
    %43 = vector.extract_strided_slice %38 {offsets = [0, 96], sizes = [8, 32], strides = [1, 1]} : vector<8x128xf32> to vector<8x32xf32>
    %44 = arith.mulf %41, %10 : vector<8x32xf32>
    %45 = arith.mulf %40, %42 : vector<8x32xf32>
    %46 = arith.addf %44, %45 : vector<8x32xf32>
    %47 = math.tanh %46 : vector<8x32xf32>
    %48 = arith.mulf %43, %47 : vector<8x32xf32>
    %49 = vector.extract_strided_slice %9 {offsets = [8, 0], sizes = [8, 128], strides = [1, 1]} : vector<64x128xf32> to vector<8x128xf32>
    %cst_14 = arith.constant dense<0.000000e+00> : vector<8x128xf32>
    %50 = tpu.matmul %28, %1, %cst_14 {dimension_numbers = #tpu.dot_dimension_numbers<[1], [0], [0], [1], [0, 0, 1, 1], [], []>} : vector<8x32xf32>, vector<32x128xf32>, vector<8x128xf32> -> vector<8x128xf32>
    %51 = arith.addf %49, %50 : vector<8x128xf32>
    %52 = arith.negf %51 : vector<8x128xf32>
    %53 = math.exp %52 : vector<8x128xf32>
    %cst_15 = arith.constant 1.000000e+00 : f32
    %54 = vector.broadcast %cst_15 : f32 to vector<8x128xf32>
    %55 = arith.addf %54, %53 : vector<8x128xf32>
    %56 = arith.divf %54, %55 : vector<8x128xf32>
    %57 = math.tanh %51 : vector<8x128xf32>
    %58 = vector.extract_strided_slice %56 {offsets = [0, 0], sizes = [8, 32], strides = [1, 1]} : vector<8x128xf32> to vector<8x32xf32>
    %59 = vector.extract_strided_slice %56 {offsets = [0, 32], sizes = [8, 32], strides = [1, 1]} : vector<8x128xf32> to vector<8x32xf32>
    %60 = vector.extract_strided_slice %57 {offsets = [0, 64], sizes = [8, 32], strides = [1, 1]} : vector<8x128xf32> to vector<8x32xf32>
    %61 = vector.extract_strided_slice %56 {offsets = [0, 96], sizes = [8, 32], strides = [1, 1]} : vector<8x128xf32> to vector<8x32xf32>
    %62 = arith.mulf %59, %26 : vector<8x32xf32>
    %63 = arith.mulf %58, %60 : vector<8x32xf32>
    %64 = arith.addf %62, %63 : vector<8x32xf32>
    %65 = math.tanh %64 : vector<8x32xf32>
    %66 = arith.mulf %61, %65 : vector<8x32xf32>
    %cst_16 = arith.constant dense<0.000000e+00> : vector<8x128xf32>
    %67 = tpu.matmul %66, %3, %cst_16 {dimension_numbers = #tpu.dot_dimension_numbers<[1], [0], [0], [1], [0, 0, 1, 1], [], []>} : vector<8x32xf32>, vector<32x128xf32>, vector<8x128xf32> -> vector<8x128xf32>
    %cst_17 = arith.constant dense<0.000000e+00> : vector<8x128xf32>
    %68 = tpu.matmul %48, %4, %cst_17 {dimension_numbers = #tpu.dot_dimension_numbers<[1], [0], [0], [1], [0, 0, 1, 1], [], []>} : vector<8x32xf32>, vector<32x128xf32>, vector<8x128xf32> -> vector<8x128xf32>
    %69 = arith.addf %67, %68 : vector<8x128xf32>
    %70 = vector.broadcast %5 : vector<1x128xf32> to vector<8x128xf32>
    %71 = arith.addf %69, %70 : vector<8x128xf32>
    %72 = arith.negf %71 : vector<8x128xf32>
    %73 = math.exp %72 : vector<8x128xf32>
    %cst_18 = arith.constant 1.000000e+00 : f32
    %74 = vector.broadcast %cst_18 : f32 to vector<8x128xf32>
    %75 = arith.addf %74, %73 : vector<8x128xf32>
    %76 = arith.divf %74, %75 : vector<8x128xf32>
    %77 = math.tanh %71 : vector<8x128xf32>
    %78 = vector.extract_strided_slice %76 {offsets = [0, 0], sizes = [8, 32], strides = [1, 1]} : vector<8x128xf32> to vector<8x32xf32>
    %79 = vector.extract_strided_slice %76 {offsets = [0, 32], sizes = [8, 32], strides = [1, 1]} : vector<8x128xf32> to vector<8x32xf32>
    %80 = vector.extract_strided_slice %77 {offsets = [0, 64], sizes = [8, 32], strides = [1, 1]} : vector<8x128xf32> to vector<8x32xf32>
    %81 = vector.extract_strided_slice %76 {offsets = [0, 96], sizes = [8, 32], strides = [1, 1]} : vector<8x128xf32> to vector<8x32xf32>
    %82 = arith.mulf %79, %46 : vector<8x32xf32>
    %83 = arith.mulf %78, %80 : vector<8x32xf32>
    %84 = arith.addf %82, %83 : vector<8x32xf32>
    %85 = math.tanh %84 : vector<8x32xf32>
    %86 = arith.mulf %81, %85 : vector<8x32xf32>
    %87 = vector.extract_strided_slice %9 {offsets = [16, 0], sizes = [8, 128], strides = [1, 1]} : vector<64x128xf32> to vector<8x128xf32>
    %cst_19 = arith.constant dense<0.000000e+00> : vector<8x128xf32>
    %88 = tpu.matmul %66, %1, %cst_19 {dimension_numbers = #tpu.dot_dimension_numbers<[1], [0], [0], [1], [0, 0, 1, 1], [], []>} : vector<8x32xf32>, vector<32x128xf32>, vector<8x128xf32> -> vector<8x128xf32>
    %89 = arith.addf %87, %88 : vector<8x128xf32>
    %90 = arith.negf %89 : vector<8x128xf32>
    %91 = math.exp %90 : vector<8x128xf32>
    %cst_20 = arith.constant 1.000000e+00 : f32
    %92 = vector.broadcast %cst_20 : f32 to vector<8x128xf32>
    %93 = arith.addf %92, %91 : vector<8x128xf32>
    %94 = arith.divf %92, %93 : vector<8x128xf32>
    %95 = math.tanh %89 : vector<8x128xf32>
    %96 = vector.extract_strided_slice %94 {offsets = [0, 0], sizes = [8, 32], strides = [1, 1]} : vector<8x128xf32> to vector<8x32xf32>
    %97 = vector.extract_strided_slice %94 {offsets = [0, 32], sizes = [8, 32], strides = [1, 1]} : vector<8x128xf32> to vector<8x32xf32>
    %98 = vector.extract_strided_slice %95 {offsets = [0, 64], sizes = [8, 32], strides = [1, 1]} : vector<8x128xf32> to vector<8x32xf32>
    %99 = vector.extract_strided_slice %94 {offsets = [0, 96], sizes = [8, 32], strides = [1, 1]} : vector<8x128xf32> to vector<8x32xf32>
    %100 = arith.mulf %97, %64 : vector<8x32xf32>
    %101 = arith.mulf %96, %98 : vector<8x32xf32>
    %102 = arith.addf %100, %101 : vector<8x32xf32>
    %103 = math.tanh %102 : vector<8x32xf32>
    %104 = arith.mulf %99, %103 : vector<8x32xf32>
    %cst_21 = arith.constant dense<0.000000e+00> : vector<8x128xf32>
    %105 = tpu.matmul %104, %3, %cst_21 {dimension_numbers = #tpu.dot_dimension_numbers<[1], [0], [0], [1], [0, 0, 1, 1], [], []>} : vector<8x32xf32>, vector<32x128xf32>, vector<8x128xf32> -> vector<8x128xf32>
    %cst_22 = arith.constant dense<0.000000e+00> : vector<8x128xf32>
    %106 = tpu.matmul %86, %4, %cst_22 {dimension_numbers = #tpu.dot_dimension_numbers<[1], [0], [0], [1], [0, 0, 1, 1], [], []>} : vector<8x32xf32>, vector<32x128xf32>, vector<8x128xf32> -> vector<8x128xf32>
    %107 = arith.addf %105, %106 : vector<8x128xf32>
    %108 = vector.broadcast %5 : vector<1x128xf32> to vector<8x128xf32>
    %109 = arith.addf %107, %108 : vector<8x128xf32>
    %110 = arith.negf %109 : vector<8x128xf32>
    %111 = math.exp %110 : vector<8x128xf32>
    %cst_23 = arith.constant 1.000000e+00 : f32
    %112 = vector.broadcast %cst_23 : f32 to vector<8x128xf32>
    %113 = arith.addf %112, %111 : vector<8x128xf32>
    %114 = arith.divf %112, %113 : vector<8x128xf32>
    %115 = math.tanh %109 : vector<8x128xf32>
    %116 = vector.extract_strided_slice %114 {offsets = [0, 0], sizes = [8, 32], strides = [1, 1]} : vector<8x128xf32> to vector<8x32xf32>
    %117 = vector.extract_strided_slice %114 {offsets = [0, 32], sizes = [8, 32], strides = [1, 1]} : vector<8x128xf32> to vector<8x32xf32>
    %118 = vector.extract_strided_slice %115 {offsets = [0, 64], sizes = [8, 32], strides = [1, 1]} : vector<8x128xf32> to vector<8x32xf32>
    %119 = vector.extract_strided_slice %114 {offsets = [0, 96], sizes = [8, 32], strides = [1, 1]} : vector<8x128xf32> to vector<8x32xf32>
    %120 = arith.mulf %117, %84 : vector<8x32xf32>
    %121 = arith.mulf %116, %118 : vector<8x32xf32>
    %122 = arith.addf %120, %121 : vector<8x32xf32>
    %123 = math.tanh %122 : vector<8x32xf32>
    %124 = arith.mulf %119, %123 : vector<8x32xf32>
    %125 = vector.extract_strided_slice %9 {offsets = [24, 0], sizes = [8, 128], strides = [1, 1]} : vector<64x128xf32> to vector<8x128xf32>
    %cst_24 = arith.constant dense<0.000000e+00> : vector<8x128xf32>
    %126 = tpu.matmul %104, %1, %cst_24 {dimension_numbers = #tpu.dot_dimension_numbers<[1], [0], [0], [1], [0, 0, 1, 1], [], []>} : vector<8x32xf32>, vector<32x128xf32>, vector<8x128xf32> -> vector<8x128xf32>
    %127 = arith.addf %125, %126 : vector<8x128xf32>
    %128 = arith.negf %127 : vector<8x128xf32>
    %129 = math.exp %128 : vector<8x128xf32>
    %cst_25 = arith.constant 1.000000e+00 : f32
    %130 = vector.broadcast %cst_25 : f32 to vector<8x128xf32>
    %131 = arith.addf %130, %129 : vector<8x128xf32>
    %132 = arith.divf %130, %131 : vector<8x128xf32>
    %133 = math.tanh %127 : vector<8x128xf32>
    %134 = vector.extract_strided_slice %132 {offsets = [0, 0], sizes = [8, 32], strides = [1, 1]} : vector<8x128xf32> to vector<8x32xf32>
    %135 = vector.extract_strided_slice %132 {offsets = [0, 32], sizes = [8, 32], strides = [1, 1]} : vector<8x128xf32> to vector<8x32xf32>
    %136 = vector.extract_strided_slice %133 {offsets = [0, 64], sizes = [8, 32], strides = [1, 1]} : vector<8x128xf32> to vector<8x32xf32>
    %137 = vector.extract_strided_slice %132 {offsets = [0, 96], sizes = [8, 32], strides = [1, 1]} : vector<8x128xf32> to vector<8x32xf32>
    %138 = arith.mulf %135, %102 : vector<8x32xf32>
    %139 = arith.mulf %134, %136 : vector<8x32xf32>
    %140 = arith.addf %138, %139 : vector<8x32xf32>
    %141 = math.tanh %140 : vector<8x32xf32>
    %142 = arith.mulf %137, %141 : vector<8x32xf32>
    %cst_26 = arith.constant dense<0.000000e+00> : vector<8x128xf32>
    %143 = tpu.matmul %142, %3, %cst_26 {dimension_numbers = #tpu.dot_dimension_numbers<[1], [0], [0], [1], [0, 0, 1, 1], [], []>} : vector<8x32xf32>, vector<32x128xf32>, vector<8x128xf32> -> vector<8x128xf32>
    %cst_27 = arith.constant dense<0.000000e+00> : vector<8x128xf32>
    %144 = tpu.matmul %124, %4, %cst_27 {dimension_numbers = #tpu.dot_dimension_numbers<[1], [0], [0], [1], [0, 0, 1, 1], [], []>} : vector<8x32xf32>, vector<32x128xf32>, vector<8x128xf32> -> vector<8x128xf32>
    %145 = arith.addf %143, %144 : vector<8x128xf32>
    %146 = vector.broadcast %5 : vector<1x128xf32> to vector<8x128xf32>
    %147 = arith.addf %145, %146 : vector<8x128xf32>
    %148 = arith.negf %147 : vector<8x128xf32>
    %149 = math.exp %148 : vector<8x128xf32>
    %cst_28 = arith.constant 1.000000e+00 : f32
    %150 = vector.broadcast %cst_28 : f32 to vector<8x128xf32>
    %151 = arith.addf %150, %149 : vector<8x128xf32>
    %152 = arith.divf %150, %151 : vector<8x128xf32>
    %153 = math.tanh %147 : vector<8x128xf32>
    %154 = vector.extract_strided_slice %152 {offsets = [0, 0], sizes = [8, 32], strides = [1, 1]} : vector<8x128xf32> to vector<8x32xf32>
    %155 = vector.extract_strided_slice %152 {offsets = [0, 32], sizes = [8, 32], strides = [1, 1]} : vector<8x128xf32> to vector<8x32xf32>
    %156 = vector.extract_strided_slice %153 {offsets = [0, 64], sizes = [8, 32], strides = [1, 1]} : vector<8x128xf32> to vector<8x32xf32>
    %157 = vector.extract_strided_slice %152 {offsets = [0, 96], sizes = [8, 32], strides = [1, 1]} : vector<8x128xf32> to vector<8x32xf32>
    %158 = arith.mulf %155, %122 : vector<8x32xf32>
    %159 = arith.mulf %154, %156 : vector<8x32xf32>
    %160 = arith.addf %158, %159 : vector<8x32xf32>
    %161 = math.tanh %160 : vector<8x32xf32>
    %162 = arith.mulf %157, %161 : vector<8x32xf32>
    %163 = vector.extract_strided_slice %9 {offsets = [32, 0], sizes = [8, 128], strides = [1, 1]} : vector<64x128xf32> to vector<8x128xf32>
    %cst_29 = arith.constant dense<0.000000e+00> : vector<8x128xf32>
    %164 = tpu.matmul %142, %1, %cst_29 {dimension_numbers = #tpu.dot_dimension_numbers<[1], [0], [0], [1], [0, 0, 1, 1], [], []>} : vector<8x32xf32>, vector<32x128xf32>, vector<8x128xf32> -> vector<8x128xf32>
    %165 = arith.addf %163, %164 : vector<8x128xf32>
    %166 = arith.negf %165 : vector<8x128xf32>
    %167 = math.exp %166 : vector<8x128xf32>
    %cst_30 = arith.constant 1.000000e+00 : f32
    %168 = vector.broadcast %cst_30 : f32 to vector<8x128xf32>
    %169 = arith.addf %168, %167 : vector<8x128xf32>
    %170 = arith.divf %168, %169 : vector<8x128xf32>
    %171 = math.tanh %165 : vector<8x128xf32>
    %172 = vector.extract_strided_slice %170 {offsets = [0, 0], sizes = [8, 32], strides = [1, 1]} : vector<8x128xf32> to vector<8x32xf32>
    %173 = vector.extract_strided_slice %170 {offsets = [0, 32], sizes = [8, 32], strides = [1, 1]} : vector<8x128xf32> to vector<8x32xf32>
    %174 = vector.extract_strided_slice %171 {offsets = [0, 64], sizes = [8, 32], strides = [1, 1]} : vector<8x128xf32> to vector<8x32xf32>
    %175 = vector.extract_strided_slice %170 {offsets = [0, 96], sizes = [8, 32], strides = [1, 1]} : vector<8x128xf32> to vector<8x32xf32>
    %176 = arith.mulf %173, %140 : vector<8x32xf32>
    %177 = arith.mulf %172, %174 : vector<8x32xf32>
    %178 = arith.addf %176, %177 : vector<8x32xf32>
    %179 = math.tanh %178 : vector<8x32xf32>
    %180 = arith.mulf %175, %179 : vector<8x32xf32>
    %cst_31 = arith.constant dense<0.000000e+00> : vector<8x128xf32>
    %181 = tpu.matmul %180, %3, %cst_31 {dimension_numbers = #tpu.dot_dimension_numbers<[1], [0], [0], [1], [0, 0, 1, 1], [], []>} : vector<8x32xf32>, vector<32x128xf32>, vector<8x128xf32> -> vector<8x128xf32>
    %cst_32 = arith.constant dense<0.000000e+00> : vector<8x128xf32>
    %182 = tpu.matmul %162, %4, %cst_32 {dimension_numbers = #tpu.dot_dimension_numbers<[1], [0], [0], [1], [0, 0, 1, 1], [], []>} : vector<8x32xf32>, vector<32x128xf32>, vector<8x128xf32> -> vector<8x128xf32>
    %183 = arith.addf %181, %182 : vector<8x128xf32>
    %184 = vector.broadcast %5 : vector<1x128xf32> to vector<8x128xf32>
    %185 = arith.addf %183, %184 : vector<8x128xf32>
    %186 = arith.negf %185 : vector<8x128xf32>
    %187 = math.exp %186 : vector<8x128xf32>
    %cst_33 = arith.constant 1.000000e+00 : f32
    %188 = vector.broadcast %cst_33 : f32 to vector<8x128xf32>
    %189 = arith.addf %188, %187 : vector<8x128xf32>
    %190 = arith.divf %188, %189 : vector<8x128xf32>
    %191 = math.tanh %185 : vector<8x128xf32>
    %192 = vector.extract_strided_slice %190 {offsets = [0, 0], sizes = [8, 32], strides = [1, 1]} : vector<8x128xf32> to vector<8x32xf32>
    %193 = vector.extract_strided_slice %190 {offsets = [0, 32], sizes = [8, 32], strides = [1, 1]} : vector<8x128xf32> to vector<8x32xf32>
    %194 = vector.extract_strided_slice %191 {offsets = [0, 64], sizes = [8, 32], strides = [1, 1]} : vector<8x128xf32> to vector<8x32xf32>
    %195 = vector.extract_strided_slice %190 {offsets = [0, 96], sizes = [8, 32], strides = [1, 1]} : vector<8x128xf32> to vector<8x32xf32>
    %196 = arith.mulf %193, %160 : vector<8x32xf32>
    %197 = arith.mulf %192, %194 : vector<8x32xf32>
    %198 = arith.addf %196, %197 : vector<8x32xf32>
    %199 = math.tanh %198 : vector<8x32xf32>
    %200 = arith.mulf %195, %199 : vector<8x32xf32>
    %201 = vector.extract_strided_slice %9 {offsets = [40, 0], sizes = [8, 128], strides = [1, 1]} : vector<64x128xf32> to vector<8x128xf32>
    %cst_34 = arith.constant dense<0.000000e+00> : vector<8x128xf32>
    %202 = tpu.matmul %180, %1, %cst_34 {dimension_numbers = #tpu.dot_dimension_numbers<[1], [0], [0], [1], [0, 0, 1, 1], [], []>} : vector<8x32xf32>, vector<32x128xf32>, vector<8x128xf32> -> vector<8x128xf32>
    %203 = arith.addf %201, %202 : vector<8x128xf32>
    %204 = arith.negf %203 : vector<8x128xf32>
    %205 = math.exp %204 : vector<8x128xf32>
    %cst_35 = arith.constant 1.000000e+00 : f32
    %206 = vector.broadcast %cst_35 : f32 to vector<8x128xf32>
    %207 = arith.addf %206, %205 : vector<8x128xf32>
    %208 = arith.divf %206, %207 : vector<8x128xf32>
    %209 = math.tanh %203 : vector<8x128xf32>
    %210 = vector.extract_strided_slice %208 {offsets = [0, 0], sizes = [8, 32], strides = [1, 1]} : vector<8x128xf32> to vector<8x32xf32>
    %211 = vector.extract_strided_slice %208 {offsets = [0, 32], sizes = [8, 32], strides = [1, 1]} : vector<8x128xf32> to vector<8x32xf32>
    %212 = vector.extract_strided_slice %209 {offsets = [0, 64], sizes = [8, 32], strides = [1, 1]} : vector<8x128xf32> to vector<8x32xf32>
    %213 = vector.extract_strided_slice %208 {offsets = [0, 96], sizes = [8, 32], strides = [1, 1]} : vector<8x128xf32> to vector<8x32xf32>
    %214 = arith.mulf %211, %178 : vector<8x32xf32>
    %215 = arith.mulf %210, %212 : vector<8x32xf32>
    %216 = arith.addf %214, %215 : vector<8x32xf32>
    %217 = math.tanh %216 : vector<8x32xf32>
    %218 = arith.mulf %213, %217 : vector<8x32xf32>
    %cst_36 = arith.constant dense<0.000000e+00> : vector<8x128xf32>
    %219 = tpu.matmul %218, %3, %cst_36 {dimension_numbers = #tpu.dot_dimension_numbers<[1], [0], [0], [1], [0, 0, 1, 1], [], []>} : vector<8x32xf32>, vector<32x128xf32>, vector<8x128xf32> -> vector<8x128xf32>
    %cst_37 = arith.constant dense<0.000000e+00> : vector<8x128xf32>
    %220 = tpu.matmul %200, %4, %cst_37 {dimension_numbers = #tpu.dot_dimension_numbers<[1], [0], [0], [1], [0, 0, 1, 1], [], []>} : vector<8x32xf32>, vector<32x128xf32>, vector<8x128xf32> -> vector<8x128xf32>
    %221 = arith.addf %219, %220 : vector<8x128xf32>
    %222 = vector.broadcast %5 : vector<1x128xf32> to vector<8x128xf32>
    %223 = arith.addf %221, %222 : vector<8x128xf32>
    %224 = arith.negf %223 : vector<8x128xf32>
    %225 = math.exp %224 : vector<8x128xf32>
    %cst_38 = arith.constant 1.000000e+00 : f32
    %226 = vector.broadcast %cst_38 : f32 to vector<8x128xf32>
    %227 = arith.addf %226, %225 : vector<8x128xf32>
    %228 = arith.divf %226, %227 : vector<8x128xf32>
    %229 = math.tanh %223 : vector<8x128xf32>
    %230 = vector.extract_strided_slice %228 {offsets = [0, 0], sizes = [8, 32], strides = [1, 1]} : vector<8x128xf32> to vector<8x32xf32>
    %231 = vector.extract_strided_slice %228 {offsets = [0, 32], sizes = [8, 32], strides = [1, 1]} : vector<8x128xf32> to vector<8x32xf32>
    %232 = vector.extract_strided_slice %229 {offsets = [0, 64], sizes = [8, 32], strides = [1, 1]} : vector<8x128xf32> to vector<8x32xf32>
    %233 = vector.extract_strided_slice %228 {offsets = [0, 96], sizes = [8, 32], strides = [1, 1]} : vector<8x128xf32> to vector<8x32xf32>
    %234 = arith.mulf %231, %198 : vector<8x32xf32>
    %235 = arith.mulf %230, %232 : vector<8x32xf32>
    %236 = arith.addf %234, %235 : vector<8x32xf32>
    %237 = math.tanh %236 : vector<8x32xf32>
    %238 = arith.mulf %233, %237 : vector<8x32xf32>
    %239 = vector.extract_strided_slice %9 {offsets = [48, 0], sizes = [8, 128], strides = [1, 1]} : vector<64x128xf32> to vector<8x128xf32>
    %cst_39 = arith.constant dense<0.000000e+00> : vector<8x128xf32>
    %240 = tpu.matmul %218, %1, %cst_39 {dimension_numbers = #tpu.dot_dimension_numbers<[1], [0], [0], [1], [0, 0, 1, 1], [], []>} : vector<8x32xf32>, vector<32x128xf32>, vector<8x128xf32> -> vector<8x128xf32>
    %241 = arith.addf %239, %240 : vector<8x128xf32>
    %242 = arith.negf %241 : vector<8x128xf32>
    %243 = math.exp %242 : vector<8x128xf32>
    %cst_40 = arith.constant 1.000000e+00 : f32
    %244 = vector.broadcast %cst_40 : f32 to vector<8x128xf32>
    %245 = arith.addf %244, %243 : vector<8x128xf32>
    %246 = arith.divf %244, %245 : vector<8x128xf32>
    %247 = math.tanh %241 : vector<8x128xf32>
    %248 = vector.extract_strided_slice %246 {offsets = [0, 0], sizes = [8, 32], strides = [1, 1]} : vector<8x128xf32> to vector<8x32xf32>
    %249 = vector.extract_strided_slice %246 {offsets = [0, 32], sizes = [8, 32], strides = [1, 1]} : vector<8x128xf32> to vector<8x32xf32>
    %250 = vector.extract_strided_slice %247 {offsets = [0, 64], sizes = [8, 32], strides = [1, 1]} : vector<8x128xf32> to vector<8x32xf32>
    %251 = vector.extract_strided_slice %246 {offsets = [0, 96], sizes = [8, 32], strides = [1, 1]} : vector<8x128xf32> to vector<8x32xf32>
    %252 = arith.mulf %249, %216 : vector<8x32xf32>
    %253 = arith.mulf %248, %250 : vector<8x32xf32>
    %254 = arith.addf %252, %253 : vector<8x32xf32>
    %255 = math.tanh %254 : vector<8x32xf32>
    %256 = arith.mulf %251, %255 : vector<8x32xf32>
    %cst_41 = arith.constant dense<0.000000e+00> : vector<8x128xf32>
    %257 = tpu.matmul %256, %3, %cst_41 {dimension_numbers = #tpu.dot_dimension_numbers<[1], [0], [0], [1], [0, 0, 1, 1], [], []>} : vector<8x32xf32>, vector<32x128xf32>, vector<8x128xf32> -> vector<8x128xf32>
    %cst_42 = arith.constant dense<0.000000e+00> : vector<8x128xf32>
    %258 = tpu.matmul %238, %4, %cst_42 {dimension_numbers = #tpu.dot_dimension_numbers<[1], [0], [0], [1], [0, 0, 1, 1], [], []>} : vector<8x32xf32>, vector<32x128xf32>, vector<8x128xf32> -> vector<8x128xf32>
    %259 = arith.addf %257, %258 : vector<8x128xf32>
    %260 = vector.broadcast %5 : vector<1x128xf32> to vector<8x128xf32>
    %261 = arith.addf %259, %260 : vector<8x128xf32>
    %262 = arith.negf %261 : vector<8x128xf32>
    %263 = math.exp %262 : vector<8x128xf32>
    %cst_43 = arith.constant 1.000000e+00 : f32
    %264 = vector.broadcast %cst_43 : f32 to vector<8x128xf32>
    %265 = arith.addf %264, %263 : vector<8x128xf32>
    %266 = arith.divf %264, %265 : vector<8x128xf32>
    %267 = math.tanh %261 : vector<8x128xf32>
    %268 = vector.extract_strided_slice %266 {offsets = [0, 0], sizes = [8, 32], strides = [1, 1]} : vector<8x128xf32> to vector<8x32xf32>
    %269 = vector.extract_strided_slice %266 {offsets = [0, 32], sizes = [8, 32], strides = [1, 1]} : vector<8x128xf32> to vector<8x32xf32>
    %270 = vector.extract_strided_slice %267 {offsets = [0, 64], sizes = [8, 32], strides = [1, 1]} : vector<8x128xf32> to vector<8x32xf32>
    %271 = vector.extract_strided_slice %266 {offsets = [0, 96], sizes = [8, 32], strides = [1, 1]} : vector<8x128xf32> to vector<8x32xf32>
    %272 = arith.mulf %269, %236 : vector<8x32xf32>
    %273 = arith.mulf %268, %270 : vector<8x32xf32>
    %274 = arith.addf %272, %273 : vector<8x32xf32>
    %275 = math.tanh %274 : vector<8x32xf32>
    %276 = arith.mulf %271, %275 : vector<8x32xf32>
    %277 = vector.extract_strided_slice %9 {offsets = [56, 0], sizes = [8, 128], strides = [1, 1]} : vector<64x128xf32> to vector<8x128xf32>
    %cst_44 = arith.constant dense<0.000000e+00> : vector<8x128xf32>
    %278 = tpu.matmul %256, %1, %cst_44 {dimension_numbers = #tpu.dot_dimension_numbers<[1], [0], [0], [1], [0, 0, 1, 1], [], []>} : vector<8x32xf32>, vector<32x128xf32>, vector<8x128xf32> -> vector<8x128xf32>
    %279 = arith.addf %277, %278 : vector<8x128xf32>
    %280 = arith.negf %279 : vector<8x128xf32>
    %281 = math.exp %280 : vector<8x128xf32>
    %cst_45 = arith.constant 1.000000e+00 : f32
    %282 = vector.broadcast %cst_45 : f32 to vector<8x128xf32>
    %283 = arith.addf %282, %281 : vector<8x128xf32>
    %284 = arith.divf %282, %283 : vector<8x128xf32>
    %285 = math.tanh %279 : vector<8x128xf32>
    %286 = vector.extract_strided_slice %284 {offsets = [0, 0], sizes = [8, 32], strides = [1, 1]} : vector<8x128xf32> to vector<8x32xf32>
    %287 = vector.extract_strided_slice %284 {offsets = [0, 32], sizes = [8, 32], strides = [1, 1]} : vector<8x128xf32> to vector<8x32xf32>
    %288 = vector.extract_strided_slice %285 {offsets = [0, 64], sizes = [8, 32], strides = [1, 1]} : vector<8x128xf32> to vector<8x32xf32>
    %289 = vector.extract_strided_slice %284 {offsets = [0, 96], sizes = [8, 32], strides = [1, 1]} : vector<8x128xf32> to vector<8x32xf32>
    %290 = arith.mulf %287, %254 : vector<8x32xf32>
    %291 = arith.mulf %286, %288 : vector<8x32xf32>
    %292 = arith.addf %290, %291 : vector<8x32xf32>
    %293 = math.tanh %292 : vector<8x32xf32>
    %294 = arith.mulf %289, %293 : vector<8x32xf32>
    %cst_46 = arith.constant dense<0.000000e+00> : vector<8x128xf32>
    %295 = tpu.matmul %294, %3, %cst_46 {dimension_numbers = #tpu.dot_dimension_numbers<[1], [0], [0], [1], [0, 0, 1, 1], [], []>} : vector<8x32xf32>, vector<32x128xf32>, vector<8x128xf32> -> vector<8x128xf32>
    %cst_47 = arith.constant dense<0.000000e+00> : vector<8x128xf32>
    %296 = tpu.matmul %276, %4, %cst_47 {dimension_numbers = #tpu.dot_dimension_numbers<[1], [0], [0], [1], [0, 0, 1, 1], [], []>} : vector<8x32xf32>, vector<32x128xf32>, vector<8x128xf32> -> vector<8x128xf32>
    %297 = arith.addf %295, %296 : vector<8x128xf32>
    %298 = vector.broadcast %5 : vector<1x128xf32> to vector<8x128xf32>
    %299 = arith.addf %297, %298 : vector<8x128xf32>
    %300 = arith.negf %299 : vector<8x128xf32>
    %301 = math.exp %300 : vector<8x128xf32>
    %cst_48 = arith.constant 1.000000e+00 : f32
    %302 = vector.broadcast %cst_48 : f32 to vector<8x128xf32>
    %303 = arith.addf %302, %301 : vector<8x128xf32>
    %304 = arith.divf %302, %303 : vector<8x128xf32>
    %305 = math.tanh %299 : vector<8x128xf32>
    %306 = vector.extract_strided_slice %304 {offsets = [0, 0], sizes = [8, 32], strides = [1, 1]} : vector<8x128xf32> to vector<8x32xf32>
    %307 = vector.extract_strided_slice %304 {offsets = [0, 32], sizes = [8, 32], strides = [1, 1]} : vector<8x128xf32> to vector<8x32xf32>
    %308 = vector.extract_strided_slice %305 {offsets = [0, 64], sizes = [8, 32], strides = [1, 1]} : vector<8x128xf32> to vector<8x32xf32>
    %309 = vector.extract_strided_slice %304 {offsets = [0, 96], sizes = [8, 32], strides = [1, 1]} : vector<8x128xf32> to vector<8x32xf32>
    %310 = arith.mulf %307, %274 : vector<8x32xf32>
    %311 = arith.mulf %306, %308 : vector<8x32xf32>
    %312 = arith.addf %310, %311 : vector<8x32xf32>
    %313 = math.tanh %312 : vector<8x32xf32>
    %314 = arith.mulf %309, %313 : vector<8x32xf32>
    %c0_49 = arith.constant 0 : index
    %c0_50 = arith.constant 0 : index
    %315 = vector.load %arg1[%c0_49, %c0_50] : memref<8x4xf32, #tpu.memory_space<vmem>>, vector<8x4xf32>
    %c128 = arith.constant 128 : index
    %c0_51 = arith.constant 0 : index
    %316 = vector.load %arg2[%c128, %c0_51] : memref<616x128xf32, #tpu.memory_space<vmem>>, vector<32x64xf32>
    %cst_52 = arith.constant dense<0.000000e+00> : vector<8x64xf32>
    %317 = tpu.matmul %314, %316, %cst_52 {dimension_numbers = #tpu.dot_dimension_numbers<[1], [0], [0], [1], [0, 0, 1, 1], [], []>} : vector<8x32xf32>, vector<32x64xf32>, vector<8x64xf32> -> vector<8x64xf32>
    %c160 = arith.constant 160 : index
    %c0_53 = arith.constant 0 : index
    %318 = vector.load %arg2[%c160, %c0_53] : memref<616x128xf32, #tpu.memory_space<vmem>>, vector<4x64xf32>
    %cst_54 = arith.constant dense<0.000000e+00> : vector<8x64xf32>
    %319 = tpu.matmul %315, %318, %cst_54 {dimension_numbers = #tpu.dot_dimension_numbers<[1], [0], [0], [1], [0, 0, 1, 1], [], []>} : vector<8x4xf32>, vector<4x64xf32>, vector<8x64xf32> -> vector<8x64xf32>
    %320 = arith.addf %317, %319 : vector<8x64xf32>
    %c168 = arith.constant 168 : index
    %c0_55 = arith.constant 0 : index
    %321 = vector.load %arg2[%c168, %c0_55] : memref<616x128xf32, #tpu.memory_space<vmem>>, vector<1x64xf32>
    %322 = vector.broadcast %321 : vector<1x64xf32> to vector<8x64xf32>
    %323 = arith.addf %320, %322 : vector<8x64xf32>
    %cst_56 = arith.constant 0.000000e+00 : f32
    %324 = vector.broadcast %cst_56 : f32 to vector<8x64xf32>
    %325 = arith.cmpf ogt, %323, %324 : vector<8x64xf32>
    %cst_57 = arith.constant 0.00999999977 : f32
    %326 = vector.broadcast %cst_57 : f32 to vector<8x64xf32>
    %327 = arith.mulf %326, %323 : vector<8x64xf32>
    %328 = arith.select %325, %323, %327 : vector<8x64xi1>, vector<8x64xf32>
    %c176 = arith.constant 176 : index
    %c0_58 = arith.constant 0 : index
    %329 = vector.load %arg2[%c176, %c0_58] : memref<616x128xf32, #tpu.memory_space<vmem>>, vector<64x32xf32>
    %cst_59 = arith.constant dense<0.000000e+00> : vector<8x32xf32>
    %330 = tpu.matmul %328, %329, %cst_59 {dimension_numbers = #tpu.dot_dimension_numbers<[1], [0], [0], [1], [0, 0, 1, 1], [], []>} : vector<8x64xf32>, vector<64x32xf32>, vector<8x32xf32> -> vector<8x32xf32>
    %c240 = arith.constant 240 : index
    %c0_60 = arith.constant 0 : index
    %331 = vector.load %arg2[%c240, %c0_60] : memref<616x128xf32, #tpu.memory_space<vmem>>, vector<1x32xf32>
    %332 = vector.broadcast %331 : vector<1x32xf32> to vector<8x32xf32>
    %333 = arith.addf %330, %332 : vector<8x32xf32>
    %cst_61 = arith.constant 0.000000e+00 : f32
    %334 = vector.broadcast %cst_61 : f32 to vector<8x32xf32>
    %335 = arith.cmpf ogt, %333, %334 : vector<8x32xf32>
    %cst_62 = arith.constant 0.00999999977 : f32
    %336 = vector.broadcast %cst_62 : f32 to vector<8x32xf32>
    %337 = arith.mulf %336, %333 : vector<8x32xf32>
    %338 = arith.select %335, %333, %337 : vector<8x32xi1>, vector<8x32xf32>
    %c248 = arith.constant 248 : index
    %c0_63 = arith.constant 0 : index
    %339 = vector.load %arg2[%c248, %c0_63] : memref<616x128xf32, #tpu.memory_space<vmem>>, vector<32x16xf32>
    %cst_64 = arith.constant dense<0.000000e+00> : vector<8x16xf32>
    %340 = tpu.matmul %338, %339, %cst_64 {dimension_numbers = #tpu.dot_dimension_numbers<[1], [0], [0], [1], [0, 0, 1, 1], [], []>} : vector<8x32xf32>, vector<32x16xf32>, vector<8x16xf32> -> vector<8x16xf32>
    %c280 = arith.constant 280 : index
    %c0_65 = arith.constant 0 : index
    %341 = vector.load %arg2[%c280, %c0_65] : memref<616x128xf32, #tpu.memory_space<vmem>>, vector<1x16xf32>
    %342 = vector.broadcast %341 : vector<1x16xf32> to vector<8x16xf32>
    %343 = arith.addf %340, %342 : vector<8x16xf32>
    %cst_66 = arith.constant 0.000000e+00 : f32
    %344 = vector.broadcast %cst_66 : f32 to vector<8x16xf32>
    %345 = arith.cmpf ogt, %343, %344 : vector<8x16xf32>
    %cst_67 = arith.constant 0.00999999977 : f32
    %346 = vector.broadcast %cst_67 : f32 to vector<8x16xf32>
    %347 = arith.mulf %346, %343 : vector<8x16xf32>
    %348 = arith.select %345, %343, %347 : vector<8x16xi1>, vector<8x16xf32>
    %c288 = arith.constant 288 : index
    %c0_68 = arith.constant 0 : index
    %349 = vector.load %arg2[%c288, %c0_68] : memref<616x128xf32, #tpu.memory_space<vmem>>, vector<16x4xf32>
    %cst_69 = arith.constant dense<0.000000e+00> : vector<8x4xf32>
    %350 = tpu.matmul %348, %349, %cst_69 {dimension_numbers = #tpu.dot_dimension_numbers<[1], [0], [0], [1], [0, 0, 1, 1], [], []>} : vector<8x16xf32>, vector<16x4xf32>, vector<8x4xf32> -> vector<8x4xf32>
    %c304 = arith.constant 304 : index
    %c0_70 = arith.constant 0 : index
    %351 = vector.load %arg2[%c304, %c0_70] : memref<616x128xf32, #tpu.memory_space<vmem>>, vector<1x4xf32>
    %352 = vector.broadcast %351 : vector<1x4xf32> to vector<8x4xf32>
    %353 = arith.addf %350, %352 : vector<8x4xf32>
    %cst_71 = arith.constant dense<0xFF800000> : vector<8xf32>
    %354 = vector.multi_reduction <maximumf>, %353, %cst_71 [1] : vector<8x4xf32> to vector<8xf32>
    %355 = vector.shape_cast %354 : vector<8xf32> to vector<8x1xf32>
    %356 = vector.broadcast %355 : vector<8x1xf32> to vector<8x4xf32>
    %357 = arith.subf %353, %356 : vector<8x4xf32>
    %358 = math.exp %357 : vector<8x4xf32>
    %cst_72 = arith.constant dense<0.000000e+00> : vector<8xf32>
    %359 = vector.multi_reduction <add>, %358, %cst_72 [1] : vector<8x4xf32> to vector<8xf32>
    %360 = vector.shape_cast %359 : vector<8xf32> to vector<8x1xf32>
    %361 = tpu.reciprocal %360 {approx = true} : vector<8x1xf32> -> vector<8x1xf32>
    %362 = vector.broadcast %361 : vector<8x1xf32> to vector<8x4xf32>
    %363 = arith.mulf %358, %362 : vector<8x4xf32>
    %c312 = arith.constant 312 : index
    %c0_73 = arith.constant 0 : index
    %364 = vector.load %arg2[%c312, %c0_73] : memref<616x128xf32, #tpu.memory_space<vmem>>, vector<32x64xf32>
    %cst_74 = arith.constant dense<0.000000e+00> : vector<8x64xf32>
    %365 = tpu.matmul %314, %364, %cst_74 {dimension_numbers = #tpu.dot_dimension_numbers<[1], [0], [0], [1], [0, 0, 1, 1], [], []>} : vector<8x32xf32>, vector<32x64xf32>, vector<8x64xf32> -> vector<8x64xf32>
    %c344 = arith.constant 344 : index
    %c0_75 = arith.constant 0 : index
    %366 = vector.load %arg2[%c344, %c0_75] : memref<616x128xf32, #tpu.memory_space<vmem>>, vector<4x64xf32>
    %cst_76 = arith.constant dense<0.000000e+00> : vector<8x64xf32>
    %367 = tpu.matmul %315, %366, %cst_76 {dimension_numbers = #tpu.dot_dimension_numbers<[1], [0], [0], [1], [0, 0, 1, 1], [], []>} : vector<8x4xf32>, vector<4x64xf32>, vector<8x64xf32> -> vector<8x64xf32>
    %368 = arith.addf %365, %367 : vector<8x64xf32>
    %c352 = arith.constant 352 : index
    %c0_77 = arith.constant 0 : index
    %369 = vector.load %arg2[%c352, %c0_77] : memref<616x128xf32, #tpu.memory_space<vmem>>, vector<1x64xf32>
    %370 = vector.broadcast %369 : vector<1x64xf32> to vector<8x64xf32>
    %371 = arith.addf %368, %370 : vector<8x64xf32>
    %cst_78 = arith.constant 0.000000e+00 : f32
    %372 = vector.broadcast %cst_78 : f32 to vector<8x64xf32>
    %373 = arith.cmpf ogt, %371, %372 : vector<8x64xf32>
    %cst_79 = arith.constant 0.00999999977 : f32
    %374 = vector.broadcast %cst_79 : f32 to vector<8x64xf32>
    %375 = arith.mulf %374, %371 : vector<8x64xf32>
    %376 = arith.select %373, %371, %375 : vector<8x64xi1>, vector<8x64xf32>
    %c360 = arith.constant 360 : index
    %c0_80 = arith.constant 0 : index
    %377 = vector.load %arg2[%c360, %c0_80] : memref<616x128xf32, #tpu.memory_space<vmem>>, vector<64x16xf32>
    %cst_81 = arith.constant dense<0.000000e+00> : vector<8x16xf32>
    %378 = tpu.matmul %376, %377, %cst_81 {dimension_numbers = #tpu.dot_dimension_numbers<[1], [0], [0], [1], [0, 0, 1, 1], [], []>} : vector<8x64xf32>, vector<64x16xf32>, vector<8x16xf32> -> vector<8x16xf32>
    %c424 = arith.constant 424 : index
    %c0_82 = arith.constant 0 : index
    %379 = vector.load %arg2[%c424, %c0_82] : memref<616x128xf32, #tpu.memory_space<vmem>>, vector<1x16xf32>
    %380 = vector.broadcast %379 : vector<1x16xf32> to vector<8x16xf32>
    %381 = arith.addf %378, %380 : vector<8x16xf32>
    %382 = math.tanh %381 : vector<8x16xf32>
    %c432 = arith.constant 432 : index
    %c0_83 = arith.constant 0 : index
    %383 = vector.load %arg2[%c432, %c0_83] : memref<616x128xf32, #tpu.memory_space<vmem>>, vector<32x64xf32>
    %cst_84 = arith.constant dense<0.000000e+00> : vector<8x64xf32>
    %384 = tpu.matmul %314, %383, %cst_84 {dimension_numbers = #tpu.dot_dimension_numbers<[1], [0], [0], [1], [0, 0, 1, 1], [], []>} : vector<8x32xf32>, vector<32x64xf32>, vector<8x64xf32> -> vector<8x64xf32>
    %c464 = arith.constant 464 : index
    %c0_85 = arith.constant 0 : index
    %385 = vector.load %arg2[%c464, %c0_85] : memref<616x128xf32, #tpu.memory_space<vmem>>, vector<4x64xf32>
    %cst_86 = arith.constant dense<0.000000e+00> : vector<8x64xf32>
    %386 = tpu.matmul %315, %385, %cst_86 {dimension_numbers = #tpu.dot_dimension_numbers<[1], [0], [0], [1], [0, 0, 1, 1], [], []>} : vector<8x4xf32>, vector<4x64xf32>, vector<8x64xf32> -> vector<8x64xf32>
    %387 = arith.addf %384, %386 : vector<8x64xf32>
    %c472 = arith.constant 472 : index
    %c0_87 = arith.constant 0 : index
    %388 = vector.load %arg2[%c472, %c0_87] : memref<616x128xf32, #tpu.memory_space<vmem>>, vector<1x64xf32>
    %389 = vector.broadcast %388 : vector<1x64xf32> to vector<8x64xf32>
    %390 = arith.addf %387, %389 : vector<8x64xf32>
    %cst_88 = arith.constant 0.000000e+00 : f32
    %391 = vector.broadcast %cst_88 : f32 to vector<8x64xf32>
    %392 = arith.cmpf ogt, %390, %391 : vector<8x64xf32>
    %cst_89 = arith.constant 0.00999999977 : f32
    %393 = vector.broadcast %cst_89 : f32 to vector<8x64xf32>
    %394 = arith.mulf %393, %390 : vector<8x64xf32>
    %395 = arith.select %392, %390, %394 : vector<8x64xi1>, vector<8x64xf32>
    %c480 = arith.constant 480 : index
    %c0_90 = arith.constant 0 : index
    %396 = vector.load %arg2[%c480, %c0_90] : memref<616x128xf32, #tpu.memory_space<vmem>>, vector<64x32xf32>
    %cst_91 = arith.constant dense<0.000000e+00> : vector<8x32xf32>
    %397 = tpu.matmul %395, %396, %cst_91 {dimension_numbers = #tpu.dot_dimension_numbers<[1], [0], [0], [1], [0, 0, 1, 1], [], []>} : vector<8x64xf32>, vector<64x32xf32>, vector<8x32xf32> -> vector<8x32xf32>
    %c544 = arith.constant 544 : index
    %c0_92 = arith.constant 0 : index
    %398 = vector.load %arg2[%c544, %c0_92] : memref<616x128xf32, #tpu.memory_space<vmem>>, vector<1x32xf32>
    %399 = vector.broadcast %398 : vector<1x32xf32> to vector<8x32xf32>
    %400 = arith.addf %397, %399 : vector<8x32xf32>
    %cst_93 = arith.constant 0.000000e+00 : f32
    %401 = vector.broadcast %cst_93 : f32 to vector<8x32xf32>
    %402 = arith.cmpf ogt, %400, %401 : vector<8x32xf32>
    %cst_94 = arith.constant 0.00999999977 : f32
    %403 = vector.broadcast %cst_94 : f32 to vector<8x32xf32>
    %404 = arith.mulf %403, %400 : vector<8x32xf32>
    %405 = arith.select %402, %400, %404 : vector<8x32xi1>, vector<8x32xf32>
    %c552 = arith.constant 552 : index
    %c0_95 = arith.constant 0 : index
    %406 = vector.load %arg2[%c552, %c0_95] : memref<616x128xf32, #tpu.memory_space<vmem>>, vector<32x16xf32>
    %cst_96 = arith.constant dense<0.000000e+00> : vector<8x16xf32>
    %407 = tpu.matmul %405, %406, %cst_96 {dimension_numbers = #tpu.dot_dimension_numbers<[1], [0], [0], [1], [0, 0, 1, 1], [], []>} : vector<8x32xf32>, vector<32x16xf32>, vector<8x16xf32> -> vector<8x16xf32>
    %c584 = arith.constant 584 : index
    %c0_97 = arith.constant 0 : index
    %408 = vector.load %arg2[%c584, %c0_97] : memref<616x128xf32, #tpu.memory_space<vmem>>, vector<1x16xf32>
    %409 = vector.broadcast %408 : vector<1x16xf32> to vector<8x16xf32>
    %410 = arith.addf %407, %409 : vector<8x16xf32>
    %cst_98 = arith.constant 0.000000e+00 : f32
    %411 = vector.broadcast %cst_98 : f32 to vector<8x16xf32>
    %412 = arith.cmpf ogt, %410, %411 : vector<8x16xf32>
    %cst_99 = arith.constant 0.00999999977 : f32
    %413 = vector.broadcast %cst_99 : f32 to vector<8x16xf32>
    %414 = arith.mulf %413, %410 : vector<8x16xf32>
    %415 = arith.select %412, %410, %414 : vector<8x16xi1>, vector<8x16xf32>
    %c592 = arith.constant 592 : index
    %c0_100 = arith.constant 0 : index
    %416 = vector.load %arg2[%c592, %c0_100] : memref<616x128xf32, #tpu.memory_space<vmem>>, vector<16x4xf32>
    %cst_101 = arith.constant dense<0.000000e+00> : vector<8x4xf32>
    %417 = tpu.matmul %415, %416, %cst_101 {dimension_numbers = #tpu.dot_dimension_numbers<[1], [0], [0], [1], [0, 0, 1, 1], [], []>} : vector<8x16xf32>, vector<16x4xf32>, vector<8x4xf32> -> vector<8x4xf32>
    %c608 = arith.constant 608 : index
    %c0_102 = arith.constant 0 : index
    %418 = vector.load %arg2[%c608, %c0_102] : memref<616x128xf32, #tpu.memory_space<vmem>>, vector<1x4xf32>
    %419 = vector.broadcast %418 : vector<1x4xf32> to vector<8x4xf32>
    %420 = arith.addf %417, %419 : vector<8x4xf32>
    %421 = math.exp %420 : vector<8x4xf32>
    %cst_103 = arith.constant 0.000000e+00 : f32
    %422 = vector.broadcast %cst_103 : f32 to vector<8x128xf32>
    %c0_104 = arith.constant 0 : index
    %c0_105 = arith.constant 0 : index
    %423 = vector.load %arg3[%c0_104, %c0_105] : memref<8x128xf32, #tpu.memory_space<vmem>>, vector<8x128xf32>
    tpu.vector_store %arg3[%c0_104, %c0_105], %422 {strides = array<i32>} : memref<8x128xf32, #tpu.memory_space<vmem>>, vector<8x128xf32>,
    %c0_106 = arith.constant 0 : index
    %c0_107 = arith.constant 0 : index
    %424 = vector.load %arg3[%c0_106, %c0_107] : memref<8x128xf32, #tpu.memory_space<vmem>>, vector<8x4xf32>
    tpu.vector_store %arg3[%c0_106, %c0_107], %363 {strides = array<i32>} : memref<8x128xf32, #tpu.memory_space<vmem>>, vector<8x4xf32>,
    %c0_108 = arith.constant 0 : index
    %c4 = arith.constant 4 : index
    %425 = vector.load %arg3[%c0_108, %c4] : memref<8x128xf32, #tpu.memory_space<vmem>>, vector<8x16xf32>
    tpu.vector_store %arg3[%c0_108, %c4], %382 {strides = array<i32>} : memref<8x128xf32, #tpu.memory_space<vmem>>, vector<8x16xf32>,
    %c0_109 = arith.constant 0 : index
    %c20 = arith.constant 20 : index
    %426 = vector.load %arg3[%c0_109, %c20] : memref<8x128xf32, #tpu.memory_space<vmem>>, vector<8x4xf32>
    tpu.vector_store %arg3[%c0_109, %c20], %421 {strides = array<i32>} : memref<8x128xf32, #tpu.memory_space<vmem>>, vector<8x4xf32>,
    return
  }
}

</mosaic_0001>

<bundles_post_ra>
// kernel: lstm_dist_forward.1
= control target key start
LH: loop header
LB: loop body
LE: loop exit
PB: predicated region body
PF: predicated region fallthrough
CT: control target
= control target key end

     0   :  { %8 = vsyncpa [#allocation3], 0  ;;  %s4330_s12 = smov [#allocation2]   ;;  %s4967_s0 = inlined_call_operand.vmem [shape: f32[64,16], index: 0, kind: input, shape index: {}]   ;;  %s4968_s1 = inlined_call_operand.vmem [shape: f32[8,4], index: 1, kind: input, shape index: {}]   ;;  %s4969_s2 = inlined_call_operand.hbm [shape: f32[616,128], index: 2, kind: input, shape index: {}]   ;;  %s4970_s3 = inlined_call_operand.vmem [shape: f32[8,128], index: 3, kind: output, shape index: {}]  }
   0x1   :  { %s18_s13 = sshll.u32 %s4330_s12, 4  ;;  %s19_s13 = int_to_ptr.vmem [resolvable:$true] %s18_s13 }
   0x2   :  { %s4316_s14 = scalar_lea.vmem %s19_s13, 9856  ;;  %p4321_p1 = scmp.lt.s32.totalorder %s19_s13, %s19_s13 }
   0x3   :  { %p4317_p0 = scmp.ne.s32.totalorder %s19_s13, %s4316_s14  ;;  %p4322_p2 = scmp.lt.s32.totalorder %s4316_s14, %s4316_s14 }
   0x5   :  { %p4323_p3 = por %p4322_p2, %p4321_p1 }
   0x7   :  { %p4324_p4 = pnand %p4323_p3, %p4317_p0 }
   0x9   :  { %4327 = shalt.err (!%p4324_p4)
}
   0xa   :  { %s4331_s15 = smov 128   ;;  %s4332_s16 = smov 8  }
   0xb   :  { %24 = dma.hbm_to_vmem [thread:$0]  %s4969_s2, 9856, %s19_s13, [#allocation3], %s4331_s15, %s4331_s15, %s4332_s16  }
   0xc   :  { %4328 = dma.done.wait [#allocation3], 9856  }
   0xd   :  { %4329 = vsyncadd [#allocation3], 4294957440  ;;  %v4333_v0 = vmov 0.0   ;;  %vm4334_vm0 = vmmov 0   ;;  %v29_v1 = vld [vmem:[#allocation2 + $0x8] sm:$0xff]  ;;  %v28_v3 = vld [vmem:[#allocation2] sm:$0xff] }
   0xe   :  { %3743 = vmatprep.subr.mxu1 %v4333_v0  ;;  %3440 = vst [vmem:[%s4970_s3] sm:$0xff] %v4333_v0  ;;  %3751 = vmatprep.mubr.msk.f32.mxu1 %vm4334_vm0, %v4333_v0  ;;  %v4369_v2 = vld [vmem:[#allocation2 + $0x28] sm:$0xff]  ;;  %v4372_v4 = vld [vmem:[#allocation2 + $0x20] sm:$0xff]  ;;  %vm56_vm1 = vcmask 130048   ;;  %v4382_v7 = vld [vmem:[#allocation2 + $0x18] sm:$0xff]  ;;  %s4335_s24 = smov 64   ;;  %s4336_s25 = smov 32  }
   0xf   :  { %3727 = vmatprep.subr.mxu0 %v29_v1  ;;  %3744 = vmatpush3.msra.mxu1 %v4369_v2  ;;  %v44_v5 = vld [vmem:[%s4967_s0] sm:$0xff]  ;;  %v45_v6 = vld [vmem:[%s4967_s0 + $0x8] sm:$0xff]  ;;  %v4387_v8 = vld [vmem:[#allocation2 + $0x10] sm:$0xff]  ;;  %vm186_vm2 = vcmask 261120   ;;  %vm2359_vm3 = vcmask 1043456   ;;  %vm2355_vm4 = vcmask 31744  }
  0x10   :  { %3728 = vmatpush3.msra.mxu0 %v29_v1  ;;  %3745 = vmatprep.subr.mxu1 %v4333_v0  ;;  %v4399_v10 = vld [vmem:[#allocation2 + $0x30] ss:$0 sm:$0xff]  ;;  %v47_v29 = vld [vmem:[%s4967_s0 + $0x18] sm:$0xff]  ;;  %v4419_v30 = vld [vmem:[#allocation2 + $0x68] sm:$0xff]  ;;  %vm2530_vm6 = vcmask 523264   ;;  %vm3446_vm12 = vcmask 162848  }
  0x11   :  { %3729 = vmatprep.subr.mxu0 %v28_v3  ;;  %3746 = vmatpush3.msra.mxu1 %v4372_v4  ;;  %v4407_v26 = vld [vmem:[#allocation2 + $0x50] sm:$0xff]  ;;  %v4421_v31 = vld [vmem:[#allocation2 + $0x48] sm:$0xff]  ;;  %v48_v32 = vld [vmem:[%s4967_s0 + $0x20] sm:$0xff]  ;;  %s4338_s18 = smov 20   ;;  %vm3452_vm14 = vcmask 195744  }
  0x12   :  { %3730 = vmatpush3.msra.mxu0 %v28_v3  ;;  %3731 = vmatprep.mubr.msk.f32.mxu0 %vm56_vm1, %v44_v5  ;;  %v46_v27 = vld [vmem:[%s4967_s0 + $0x10] sm:$0xff]  ;;  %v4430_v33 = vld [vmem:[#allocation2 + $0x60] sm:$0xff]  ;;  %v49_v34 = vld [vmem:[%s4967_s0 + $0x28] sm:$0xff] }
  0x13   :  { %3747 = vmatprep.subr.mxu1 %v4333_v0  ;;  %3732 = vmatmul.mubr.msk.f32.vlgmr.msra.gmra.mxu0 %vm56_vm1, %v45_v6  ;;  %v4412_v28 = vld [vmem:[#allocation2 + $0x70] sm:$0xff]  ;;  %v4439_v35 = vld [vmem:[#allocation2 + $0x58] sm:$0xff]  ;;  %v4441_v36 = vld [vmem:[#allocation2 + $0x40] sm:$0xff] }
  0x14   :  { %3748 = vmatpush3.msra.mxu1 %v4382_v7  ;;  %3765 = vmatprep.subr.mxu0 %v4333_v0  ;;  %v50_v37 = vld [vmem:[%s4967_s0 + $0x30] sm:$0xff]  ;;  %v51_v38 = vld [vmem:[%s4967_s0 + $0x38] sm:$0xff] }
  0x15   :  { %3749 = vmatprep.subr.mxu1 %v4333_v0  ;;  %3766 = vmatpush3.msra.mxu0 %v4407_v26  ;;  %v4459_v40 = vld [vmem:[#allocation2 + $0x38] sm:$0xff] }
  0x16   :  { %3750 = vmatpush3.msra.mxu1 %v4387_v8  ;;  %3734 = vmatprep.mubr.msk.f32.mxu0 %vm56_vm1, %v46_v27  ;;  %v4514_v53 = vld [vmem:[#allocation2 + $0x78] ss:$0 sm:$0xff] }
  0x17   :  { %3752 = vmatmul.mubr.f32.vlgmr.msra.gmra.mxu1 %v4333_v0  ;;  %3754 = vmatprep.subr.mxu1 %v4333_v0 }
  0x18   :  { %3762 = vmatprep.mubr.msk.f32.mxu1 %vm4334_vm0, %v4333_v0  ;;  %3755 = vmatpush3.msra.mxu1 %v4412_v28 }
  0x19   :  { %3735 = vmatmul.mubr.msk.f32.gmra.mxu0 %vm56_vm1, %v47_v29  ;;  %3756 = vmatprep.subr.mxu1 %v4333_v0 }
  0x1a   :  { %3767 = vmatprep.subr.mxu0 %v4333_v0  ;;  %3757 = vmatpush3.msra.mxu1 %v4419_v30 }
  0x1b   :  { %3768 = vmatpush3.msra.mxu0 %v4421_v31  ;;  %3758 = vmatprep.subr.mxu1 %v4333_v0 }
  0x1c   :  { %3737 = vmatprep.mubr.msk.f32.mxu0 %vm56_vm1, %v48_v32  ;;  %3759 = vmatpush3.msra.mxu1 %v4430_v33 }
  0x1d   :  { %3738 = vmatmul.mubr.msk.f32.gmra.mxu0 %vm56_vm1, %v49_v34  ;;  %3760 = vmatprep.subr.mxu1 %v4333_v0 }
  0x1e   :  { %3769 = vmatprep.subr.mxu0 %v4333_v0  ;;  %3761 = vmatpush3.msra.mxu1 %v4439_v35 }
  0x1f   :  { %3770 = vmatpush3.msra.mxu0 %v4441_v36  ;;  %3776 = vmatprep.subr.mxu1 %v4333_v0 }
  0x20   :  { %3740 = vmatprep.mubr.msk.f32.mxu0 %vm56_vm1, %v50_v37  ;;  %3763 = vmatmul.mubr.f32.vlgmr.msra.gmra.mxu1 %v4333_v0 }
  0x21   :  { %3741 = vmatmul.mubr.msk.f32.gmra.mxu0 %vm56_vm1, %v51_v38  ;;  %3777 = vmatpush3.msra.mxu1 %v4369_v2 }
  0x22   :  { %3778 = vmatprep.subr.mxu1 %v4333_v0  ;;  %3771 = vmatprep.subr.mxu0 %v4333_v0 }
  0x23   :  { %3779 = vmatpush3.msra.mxu1 %v4372_v4  ;;  %3772 = vmatpush3.msra.mxu0 %v4459_v40 }
  0x24   :  { %3780 = vmatprep.subr.mxu1 %v4333_v0  ;;  %3773 = vmatprep.mubr.msk.f32.mxu0 %vm4334_vm0, %v4333_v0 }
  0x25   :  { %3781 = vmatpush3.msra.mxu1 %v4382_v7  ;;  %3784 = vmatprep.mubr.msk.f32.mxu1 %vm4334_vm0, %v4333_v0 }
  0x26   :  { %3782 = vmatprep.subr.mxu1 %v4333_v0  ;;  %3787 = vmatprep.subr.mxu0 %v4333_v0 }
  0x27   :  { %3783 = vmatpush3.msra.mxu1 %v4387_v8 }
  0x28   :  { %3798 = vmatprep.subr.mxu1 %v4333_v0 }
  0xd3   :  { %v4397_v9 = vpop.f32.mrf.mxu0 }
  0xd4   :  { %v153_v52 = vadd.f32 %v4397_v9, %v4399_v10 }
  0xd5   :  { %v147_v11 = vpop.f32.mrf.mxu0 }
  0xd6   :  { %v148_v12 = vadd.f32 %v4399_v10, %v147_v11 }
  0xd7   :  { %v256_v13 = vpop.f32.mrf.mxu1 }
  0xd8   :  { %v260_v14 = vadd.f32 %v256_v13, %v148_v12 }
  0xd9   :  { %v3753_v15 = vpop.f32.mrf.mxu1  ;;  %v4500_v46 = vpop.f32.mrf.mxu0 }
  0xda   :  { %4157 = vtanh.f32 %v260_v14  ;;  %v3468_v17 = vmul.f32 -1.442695, %v260_v14 }
  0xdb   :  { %v4502_v47 = vpop.f32.mrf.mxu0 }
  0xdc   :  { %4159 = vpow2.f32 %v3468_v17 }
  0xdd   :  { %v4504_v48 = vpop.f32.mrf.mxu0 }
  0xdf   :  { %v4506_v49 = vpop.f32.mrf.mxu0 }
  0xe0   :  { %v351_v43 = vpop.f32.mrf.mxu1 }
  0xe1   :  { %v4508_v50 = vpop.f32.mrf.mxu0 }
  0xe2   :  { %v3764_v44 = vpop.f32.mrf.mxu1 }
  0xe3   :  { %v4510_v51 = vpop.f32.mrf.mxu0 }
  0xe7   :  { %v4158_v16 = vpop.eup %4157 }
  0xe8   :  { %270 = vrot.lane.b32.xlu0 %v4158_v16, %s4335_s24 }
  0xe9   :  { %v4160_v18 = vpop.eup %4159 }
  0xea   :  { %v264_v19 = vadd.f32 1.0, %v4160_v18 }
  0xec   :  { %4161 = vrcp.f32 %v264_v19 }
  0xf9   :  { %v4162_v20 = vpop.eup %4161 }
  0xfa   :  { %v268_v23 = vmul.f32 0.0, %v4162_v20 }
 0x15a   :  { %v271_v21 = vpop.permute.xlu0 %270 }
 0x15b   :  { %v273_v22 = vmul.f32 %v4162_v20, %v271_v21 }
 0x15d   :  { %275 = vrot.lane.b32.xlu0 %v273_v22, %s4336_s25 }
 0x1cf   :  { %v276_v24 = vpop.permute.xlu0 %275 }
 0x1d0   :  { %v4404_v25 = vadd.f32 %v276_v24, %v268_v23 }
 0x1d2   :  { %4163 = vtanh.f32 %v4404_v25 }
 0x1df   :  { %v4164_v39 = vpop.eup %4163 }
 0x1e0   :  { %281 = vrot.lane.b32.xlu1 %v4164_v39, %s4335_s24 }
 0x252   :  { %v282_v41 = vpop.permute.xlu1 %281 }
 0x253   :  { %v284_v42 = vmul.f32 %v4162_v20, %v282_v41 }
 0x255   :  { %356 = vrot.lane.b32.xlu1 %v284_v42, %s4336_s25 }
 0x2c7   :  { %v357_v45 = vpop.permute.xlu1 %356 }
 0x2c8   :  { %3774 = vmatmul.mubr.msk.f32.vlgmr.msra.gmra.mxu0 %vm186_vm2, %v357_v45  ;;  %3785 = vmatmul.mubr.msk.f32.vlgmr.msra.gmra.mxu1 %vm186_vm2, %v357_v45  ;;  %v158_v45 = vadd.f32 %v4399_v10, %v4502_v47 }
 0x2c9   :  { %3799 = vmatpush3.msra.mxu1 %v4407_v26  ;;  %3788 = vmatpush3.msra.mxu0 %v4412_v28 }
 0x2ca   :  { %3800 = vmatprep.subr.mxu1 %v4333_v0  ;;  %3789 = vmatprep.subr.mxu0 %v4333_v0 }
 0x2cb   :  { %3801 = vmatpush3.msra.mxu1 %v4421_v31  ;;  %3790 = vmatpush3.msra.mxu0 %v4419_v30 }
 0x2cc   :  { %3802 = vmatprep.subr.mxu1 %v4333_v0  ;;  %3791 = vmatprep.subr.mxu0 %v4333_v0 }
 0x2cd   :  { %3803 = vmatpush3.msra.mxu1 %v4441_v36  ;;  %3792 = vmatpush3.msra.mxu0 %v4430_v33 }
 0x2ce   :  { %3804 = vmatprep.subr.mxu1 %v4333_v0  ;;  %3806 = vmatprep.mubr.msk.f32.mxu1 %vm4334_vm0, %v4333_v0 }
 0x2cf   :  { %3805 = vmatpush3.msra.mxu1 %v4459_v40  ;;  %3793 = vmatprep.subr.mxu0 %v4333_v0 }
 0x2d0   :  { %3794 = vmatpush3.msra.mxu0 %v4439_v35  ;;  %3795 = vmatprep.mubr.msk.f32.mxu0 %vm4334_vm0, %v4333_v0 }
 0x2d1   :  { %3809 = vmatprep.subr.mxu0 %v4333_v0  ;;  %3820 = vmatprep.subr.mxu1 %v4333_v0 }
 0x388   :  { %v426_v54 = vpop.f32.mrf.mxu0  ;;  %v525_v55 = vpop.f32.mrf.mxu1 }
 0x389   :  { %v427_v56 = vadd.f32 %v426_v54, %v351_v43  ;;  %v529_v57 = vadd.f32 %v525_v55, %v153_v52 }
 0x38a   :  { %v3775_v58 = vpop.f32.mrf.mxu0  ;;  %v3786_v59 = vpop.f32.mrf.mxu1 }
 0x38b   :  { %v434_v60 = vadd.f32 %v4514_v53, %v427_v56  ;;  %4165 = vtanh.f32 %v529_v57  ;;  %v3473_v63 = vmul.f32 -1.442695, %v529_v57 }
 0x38d   :  { %4167 = vtanh.f32 %v434_v60  ;;  %v3471_v1 = vmul.f32 -1.442695, %v434_v60 }
 0x38e   :  { %4169 = vpow2.f32 %v3473_v63 }
 0x38f   :  { %4171 = vpow2.f32 %v3471_v1 }
 0x398   :  { %v4166_v61 = vpop.eup %4165 }
 0x399   :  { %539 = vrot.lane.b32.xlu1 %v4166_v61, %s4335_s24 }
 0x39a   :  { %v4168_v62 = vpop.eup %4167 }
 0x39b   :  { %444 = vrot.lane.b32.xlu0 %v4168_v62, %s4335_s24  ;;  %v4170_v3 = vpop.eup %4169 }
 0x39c   :  { %v4172_v5 = vpop.eup %4171  ;;  %v533_v6 = vadd.f32 1.0, %v4170_v3 }
 0x39d   :  { %v438_v9 = vadd.f32 1.0, %v4172_v5 }
 0x39e   :  { %4173 = vrcp.f32 %v533_v6 }
 0x39f   :  { %4175 = vrcp.f32 %v438_v9 }
 0x3ab   :  { %v4174_v11 = vpop.eup %4173 }
 0x3ac   :  { %v4176_v14 = vpop.eup %4175  ;;  %v537_v17 = vmul.f32 %v4174_v11, %v4404_v25 }
 0x3ad   :  { %v442_v20 = vmul.f32 0.0, %v4176_v14 }
 0x40b   :  { %v540_v12 = vpop.permute.xlu1 %539 }
 0x40c   :  { %v542_v13 = vmul.f32 %v4174_v11, %v540_v12 }
 0x40d   :  { %v445_v15 = vpop.permute.xlu0 %444 }
 0x40e   :  { %v447_v16 = vmul.f32 %v4176_v14, %v445_v15  ;;  %544 = vrot.lane.b32.xlu1 %v542_v13, %s4336_s25 }
 0x410   :  { %449 = vrot.lane.b32.xlu0 %v447_v16, %s4336_s25 }
 0x480   :  { %v545_v18 = vpop.permute.xlu1 %544 }
 0x481   :  { %v4522_v19 = vadd.f32 %v545_v18, %v537_v17 }
 0x482   :  { %v450_v21 = vpop.permute.xlu0 %449 }
 0x483   :  { %4177 = vtanh.f32 %v4522_v19  ;;  %v4525_v22 = vadd.f32 %v450_v21, %v442_v20 }
 0x485   :  { %4179 = vtanh.f32 %v4525_v22 }
 0x490   :  { %v4178_v23 = vpop.eup %4177 }
 0x491   :  { %550 = vrot.lane.b32.xlu1 %v4178_v23, %s4335_s24 }
 0x492   :  { %v4180_v24 = vpop.eup %4179 }
 0x493   :  { %455 = vrot.lane.b32.xlu0 %v4180_v24, %s4335_s24 }
 0x503   :  { %v551_v27 = vpop.permute.xlu1 %550 }
 0x504   :  { %v553_v29 = vmul.f32 %v4174_v11, %v551_v27 }
 0x505   :  { %v456_v25 = vpop.permute.xlu0 %455 }
 0x506   :  { %v458_v32 = vmul.f32 %v4176_v14, %v456_v25  ;;  %630 = vrot.lane.b32.xlu1 %v553_v29, %s4336_s25 }
 0x508   :  { %555 = vrot.lane.b32.xlu0 %v458_v32, %s4336_s25  ;;  %v163_v32 = vadd.f32 %v4500_v46, %v4399_v10 }
 0x578   :  { %v631_v34 = vpop.permute.xlu1 %630 }
 0x579   :  { %3807 = vmatmul.mubr.msk.f32.vlgmr.msra.gmra.mxu1 %vm186_vm2, %v631_v34 }
 0x57a   :  { %v556_v37 = vpop.permute.xlu0 %555  ;;  %3821 = vmatpush3.msra.mxu1 %v4412_v28  ;;  %3828 = vmatprep.mubr.msk.f32.mxu1 %vm4334_vm0, %v4333_v0 }
 0x57b   :  { %3796 = vmatmul.mubr.msk.f32.vlgmr.msra.gmra.mxu0 %vm186_vm2, %v556_v37  ;;  %3822 = vmatprep.subr.mxu1 %v4333_v0 }
 0x57c   :  { %3810 = vmatpush3.msra.mxu0 %v4369_v2  ;;  %3817 = vmatprep.mubr.msk.f32.mxu0 %vm4334_vm0, %v4333_v0 }
 0x57d   :  { %3811 = vmatprep.subr.mxu0 %v4333_v0  ;;  %3823 = vmatpush3.msra.mxu1 %v4419_v30 }
 0x57e   :  { %3812 = vmatpush3.msra.mxu0 %v4372_v4  ;;  %3824 = vmatprep.subr.mxu1 %v4333_v0 }
 0x57f   :  { %3813 = vmatprep.subr.mxu0 %v4333_v0  ;;  %3825 = vmatpush3.msra.mxu1 %v4430_v33 }
 0x580   :  { %3814 = vmatpush3.msra.mxu0 %v4382_v7  ;;  %3826 = vmatprep.subr.mxu1 %v4333_v0 }
 0x581   :  { %3815 = vmatprep.subr.mxu0 %v4333_v0  ;;  %3827 = vmatpush3.msra.mxu1 %v4439_v35 }
 0x582   :  { %3816 = vmatpush3.msra.mxu0 %v4387_v8  ;;  %3842 = vmatprep.subr.mxu1 %v4333_v0 }
 0x583   :  { %3818 = vmatmul.mubr.msk.f32.vlgmr.msra.gmra.mxu0 %vm186_vm2, %v631_v34  ;;  %3831 = vmatprep.subr.mxu0 %v4333_v0 }
 0x584   :  { %3832 = vmatpush3.msra.mxu0 %v4407_v26  ;;  %3839 = vmatprep.mubr.msk.f32.mxu0 %vm4334_vm0, %v4333_v0 }
 0x585   :  { %3833 = vmatprep.subr.mxu0 %v4333_v0 }
 0x586   :  { %3834 = vmatpush3.msra.mxu0 %v4421_v31 }
 0x587   :  { %3835 = vmatprep.subr.mxu0 %v4333_v0 }
 0x588   :  { %3836 = vmatpush3.msra.mxu0 %v4441_v36 }
 0x589   :  { %3837 = vmatprep.subr.mxu0 %v4333_v0 }
 0x58a   :  { %3838 = vmatpush3.msra.mxu0 %v4459_v40 }
 0x58b   :  { %3853 = vmatprep.subr.mxu0 %v4333_v0 }
 0x639   :  { %v700_v38 = vpop.f32.mrf.mxu1 }
 0x63b   :  { %v625_v39 = vpop.f32.mrf.mxu0  ;;  %v3808_v41 = vpop.f32.mrf.mxu1 }
 0x63c   :  { %v701_v42 = vadd.f32 %v700_v38, %v625_v39 }
 0x63d   :  { %v3797_v43 = vpop.f32.mrf.mxu0 }
 0x63e   :  { %v704_v44 = vadd.f32 %v4514_v53, %v701_v42 }
 0x640   :  { %4181 = vtanh.f32 %v704_v44  ;;  %v3476_v58 = vmul.f32 -1.442695, %v704_v44 }
 0x643   :  { %v795_v52 = vpop.f32.mrf.mxu0 }
 0x644   :  { %v799_v54 = vadd.f32 %v795_v52, %v158_v45 }
 0x645   :  { %v3819_v55 = vpop.f32.mrf.mxu0 }
 0x646   :  { %4183 = vtanh.f32 %v799_v54  ;;  %v3478_v59 = vmul.f32 -1.442695, %v799_v54 }
 0x647   :  { %4185 = vpow2.f32 %v3476_v58 }
 0x648   :  { %4187 = vpow2.f32 %v3478_v59 }
 0x64d   :  { %v4182_v56 = vpop.eup %4181 }
 0x64e   :  { %714 = vrot.lane.b32.xlu0 %v4182_v56, %s4335_s24 }
 0x653   :  { %v4184_v57 = vpop.eup %4183 }
 0x654   :  { %809 = vrot.lane.b32.xlu1 %v4184_v57, %s4335_s24  ;;  %v4186_v60 = vpop.eup %4185 }
 0x655   :  { %v708_v61 = vadd.f32 1.0, %v4186_v60  ;;  %v4188_v62 = vpop.eup %4187 }
 0x656   :  { %v803_v63 = vadd.f32 1.0, %v4188_v62 }
 0x657   :  { %4189 = vrcp.f32 %v708_v61 }
 0x658   :  { %4191 = vrcp.f32 %v803_v63 }
 0x664   :  { %v4190_v47 = vpop.eup %4189 }
 0x665   :  { %v4192_v5 = vpop.eup %4191  ;;  %v712_v11 = vmul.f32 %v4190_v47, %v4525_v22 }
 0x666   :  { %v807_v14 = vmul.f32 %v4192_v5, %v4522_v19 }
 0x6c0   :  { %v715_v1 = vpop.permute.xlu0 %714 }
 0x6c1   :  { %v717_v3 = vmul.f32 %v4190_v47, %v715_v1 }
 0x6c3   :  { %719 = vrot.lane.b32.xlu0 %v717_v3, %s4336_s25 }
 0x6c6   :  { %v810_v6 = vpop.permute.xlu1 %809 }
 0x6c7   :  { %v812_v9 = vmul.f32 %v4192_v5, %v810_v6 }
 0x6c9   :  { %814 = vrot.lane.b32.xlu1 %v812_v9, %s4336_s25 }
 0x735   :  { %v720_v12 = vpop.permute.xlu0 %719 }
 0x736   :  { %v4573_v13 = vadd.f32 %v720_v12, %v712_v11 }
 0x738   :  { %4193 = vtanh.f32 %v4573_v13 }
 0x73b   :  { %v815_v15 = vpop.permute.xlu1 %814 }
 0x73c   :  { %v4577_v16 = vadd.f32 %v815_v15, %v807_v14 }
 0x73e   :  { %4195 = vtanh.f32 %v4577_v16 }
 0x745   :  { %v4194_v17 = vpop.eup %4193 }
 0x746   :  { %725 = vrot.lane.b32.xlu0 %v4194_v17, %s4335_s24 }
 0x74b   :  { %v4196_v18 = vpop.eup %4195 }
 0x74c   :  { %820 = vrot.lane.b32.xlu1 %v4196_v18, %s4335_s24 }
 0x7b8   :  { %v726_v20 = vpop.permute.xlu0 %725 }
 0x7b9   :  { %v728_v21 = vmul.f32 %v4190_v47, %v726_v20 }
 0x7bb   :  { %825 = vrot.lane.b32.xlu0 %v728_v21, %s4336_s25 }
 0x7be   :  { %v821_v22 = vpop.permute.xlu1 %820 }
 0x7bf   :  { %v823_v23 = vmul.f32 %v4192_v5, %v821_v22 }
 0x7c1   :  { %900 = vrot.lane.b32.xlu1 %v823_v23, %s4336_s25 }
 0x82d   :  { %v826_v19 = vpop.permute.xlu0 %825 }
 0x82e   :  { %3829 = vmatmul.mubr.msk.f32.vlgmr.msra.gmra.mxu1 %vm186_vm2, %v826_v19 }
 0x82f   :  { %3843 = vmatpush3.msra.mxu1 %v4369_v2  ;;  %3850 = vmatprep.mubr.msk.f32.mxu1 %vm4334_vm0, %v4333_v0 }
 0x830   :  { %3844 = vmatprep.subr.mxu1 %v4333_v0 }
 0x831   :  { %3845 = vmatpush3.msra.mxu1 %v4372_v4 }
 0x832   :  { %3846 = vmatprep.subr.mxu1 %v4333_v0 }
 0x833   :  { %3847 = vmatpush3.msra.mxu1 %v4382_v7  ;;  %v901_v24 = vpop.permute.xlu1 %900 }
 0x834   :  { %3840 = vmatmul.mubr.msk.f32.vlgmr.msra.gmra.mxu0 %vm186_vm2, %v901_v24  ;;  %3848 = vmatprep.subr.mxu1 %v4333_v0 }
 0x835   :  { %3849 = vmatpush3.msra.mxu1 %v4387_v8  ;;  %3854 = vmatpush3.msra.mxu0 %v4412_v28 }
 0x836   :  { %3851 = vmatmul.mubr.msk.f32.vlgmr.msra.gmra.mxu1 %vm186_vm2, %v901_v24  ;;  %3864 = vmatprep.subr.mxu1 %v4333_v0  ;;  %v168_v24 = vadd.f32 %v4399_v10, %v4506_v49 }
 0x837   :  { %3855 = vmatprep.subr.mxu0 %v4333_v0  ;;  %3865 = vmatpush3.msra.mxu1 %v4407_v26 }
 0x838   :  { %3856 = vmatpush3.msra.mxu0 %v4419_v30  ;;  %3866 = vmatprep.subr.mxu1 %v4333_v0 }
 0x839   :  { %3857 = vmatprep.subr.mxu0 %v4333_v0  ;;  %3867 = vmatpush3.msra.mxu1 %v4421_v31 }
 0x83a   :  { %3858 = vmatpush3.msra.mxu0 %v4430_v33  ;;  %3868 = vmatprep.subr.mxu1 %v4333_v0 }
 0x83b   :  { %3859 = vmatprep.subr.mxu0 %v4333_v0  ;;  %3869 = vmatpush3.msra.mxu1 %v4441_v36 }
 0x83c   :  { %3860 = vmatpush3.msra.mxu0 %v4439_v35  ;;  %3870 = vmatprep.subr.mxu1 %v4333_v0 }
 0x83d   :  { %3871 = vmatpush3.msra.mxu1 %v4459_v40  ;;  %3872 = vmatprep.mubr.msk.f32.mxu1 %vm4334_vm0, %v4333_v0 }
 0x83e   :  { %3861 = vmatprep.mubr.msk.f32.mxu0 %vm4334_vm0, %v4333_v0  ;;  %3875 = vmatprep.subr.mxu0 %v4333_v0 }
 0x83f   :  { %3886 = vmatprep.subr.mxu1 %v4333_v0 }
 0x8ee   :  { %v895_v27 = vpop.f32.mrf.mxu1 }
 0x8f0   :  { %v3830_v29 = vpop.f32.mrf.mxu1 }
 0x8f4   :  { %v970_v25 = vpop.f32.mrf.mxu0 }
 0x8f5   :  { %v971_v34 = vadd.f32 %v970_v25, %v895_v27 }
 0x8f6   :  { %v3841_v37 = vpop.f32.mrf.mxu0  ;;  %v1065_v38 = vpop.f32.mrf.mxu1 }
 0x8f7   :  { %v974_v39 = vadd.f32 %v4514_v53, %v971_v34  ;;  %v1069_v41 = vadd.f32 %v1065_v38, %v163_v32 }
 0x8f8   :  { %v3852_v42 = vpop.f32.mrf.mxu1 }
 0x8f9   :  { %4197 = vtanh.f32 %v974_v39  ;;  %v3481_v45 = vmul.f32 -1.442695, %v974_v39  ;;  %v3483_v52 = vmul.f32 -1.442695, %v1069_v41 }
 0x8fa   :  { %4199 = vtanh.f32 %v1069_v41 }
 0x8fb   :  { %4201 = vpow2.f32 %v3481_v45 }
 0x8fc   :  { %4203 = vpow2.f32 %v3483_v52 }
 0x906   :  { %v4198_v43 = vpop.eup %4197 }
 0x907   :  { %v4200_v44 = vpop.eup %4199  ;;  %984 = vrot.lane.b32.xlu0 %v4198_v43, %s4335_s24 }
 0x908   :  { %1079 = vrot.lane.b32.xlu1 %v4200_v44, %s4335_s24  ;;  %v4202_v46 = vpop.eup %4201 }
 0x909   :  { %v4204_v54 = vpop.eup %4203  ;;  %v978_v55 = vadd.f32 1.0, %v4202_v46 }
 0x90a   :  { %v1073_v56 = vadd.f32 1.0, %v4204_v54 }
 0x90b   :  { %4205 = vrcp.f32 %v978_v55 }
 0x90c   :  { %4207 = vrcp.f32 %v1073_v56 }
 0x918   :  { %v4206_v57 = vpop.eup %4205 }
 0x919   :  { %v4208_v59 = vpop.eup %4207  ;;  %v982_v63 = vmul.f32 %v4206_v57, %v4573_v13 }
 0x91a   :  { %v1077_v47 = vmul.f32 %v4208_v59, %v4577_v16 }
 0x979   :  { %v985_v58 = vpop.permute.xlu0 %984 }
 0x97a   :  { %v1080_v60 = vpop.permute.xlu1 %1079  ;;  %v987_v61 = vmul.f32 %v4206_v57, %v985_v58 }
 0x97b   :  { %v1082_v62 = vmul.f32 %v4208_v59, %v1080_v60 }
 0x97c   :  { %989 = vrot.lane.b32.xlu0 %v987_v61, %s4336_s25 }
 0x97d   :  { %1084 = vrot.lane.b32.xlu1 %v1082_v62, %s4336_s25 }
 0x9ee   :  { %v990_v1 = vpop.permute.xlu0 %989 }
 0x9ef   :  { %v1085_v3 = vpop.permute.xlu1 %1084  ;;  %v4626_v5 = vadd.f32 %v990_v1, %v982_v63 }
 0x9f0   :  { %v4628_v6 = vadd.f32 %v1085_v3, %v1077_v47 }
 0x9f1   :  { %4209 = vtanh.f32 %v4626_v5 }
 0x9f2   :  { %4211 = vtanh.f32 %v4628_v6 }
 0x9fe   :  { %v4210_v9 = vpop.eup %4209 }
 0x9ff   :  { %v4212_v11 = vpop.eup %4211  ;;  %995 = vrot.lane.b32.xlu0 %v4210_v9, %s4335_s24  ;;  %v173_v9 = vadd.f32 %v4504_v48, %v4399_v10 }
 0xa00   :  { %1090 = vrot.lane.b32.xlu1 %v4212_v11, %s4335_s24 }
 0xa71   :  { %v996_v12 = vpop.permute.xlu0 %995 }
 0xa72   :  { %v1091_v13 = vpop.permute.xlu1 %1090  ;;  %v998_v14 = vmul.f32 %v4206_v57, %v996_v12 }
 0xa73   :  { %v1093_v15 = vmul.f32 %v4208_v59, %v1091_v13 }
 0xa74   :  { %1095 = vrot.lane.b32.xlu0 %v998_v14, %s4336_s25 }
 0xa75   :  { %1170 = vrot.lane.b32.xlu1 %v1093_v15, %s4336_s25 }
 0xae6   :  { %v1096_v16 = vpop.permute.xlu0 %1095 }
 0xae7   :  { %v1171_v17 = vpop.permute.xlu1 %1170  ;;  %3862 = vmatmul.mubr.msk.f32.vlgmr.msra.gmra.mxu0 %vm186_vm2, %v1096_v16 }
 0xae8   :  { %3873 = vmatmul.mubr.msk.f32.vlgmr.msra.gmra.mxu1 %vm186_vm2, %v1171_v17  ;;  %3876 = vmatpush3.msra.mxu0 %v4369_v2 }
 0xae9   :  { %3877 = vmatprep.subr.mxu0 %v4333_v0  ;;  %3883 = vmatprep.mubr.msk.f32.mxu0 %vm4334_vm0, %v4333_v0 }
 0xaea   :  { %3878 = vmatpush3.msra.mxu0 %v4372_v4  ;;  %3887 = vmatpush3.msra.mxu1 %v4412_v28 }
 0xaeb   :  { %3879 = vmatprep.subr.mxu0 %v4333_v0  ;;  %3888 = vmatprep.subr.mxu1 %v4333_v0 }
 0xaec   :  { %3880 = vmatpush3.msra.mxu0 %v4382_v7  ;;  %3889 = vmatpush3.msra.mxu1 %v4419_v30 }
 0xaed   :  { %3881 = vmatprep.subr.mxu0 %v4333_v0  ;;  %3890 = vmatprep.subr.mxu1 %v4333_v0 }
 0xaee   :  { %3882 = vmatpush3.msra.mxu0 %v4387_v8  ;;  %3891 = vmatpush3.msra.mxu1 %v4430_v33 }
 0xaef   :  { %3884 = vmatmul.mubr.msk.f32.vlgmr.msra.gmra.mxu0 %vm186_vm2, %v1171_v17  ;;  %3892 = vmatprep.subr.mxu1 %v4333_v0 }
 0xaf0   :  { %3897 = vmatprep.subr.mxu0 %v4333_v0  ;;  %3893 = vmatpush3.msra.mxu1 %v4439_v35 }
 0xaf1   :  { %3898 = vmatpush3.msra.mxu0 %v4407_v26  ;;  %3894 = vmatprep.mubr.msk.f32.mxu1 %vm4334_vm0, %v4333_v0 }
 0xaf2   :  { %3899 = vmatprep.subr.mxu0 %v4333_v0  ;;  %3908 = vmatprep.subr.mxu1 %v4333_v0 }
 0xaf3   :  { %3900 = vmatpush3.msra.mxu0 %v4421_v31  ;;  %3905 = vmatprep.mubr.msk.f32.mxu0 %vm4334_vm0, %v4333_v0 }
 0xaf4   :  { %3901 = vmatprep.subr.mxu0 %v4333_v0 }
 0xaf5   :  { %3902 = vmatpush3.msra.mxu0 %v4441_v36 }
 0xaf6   :  { %3903 = vmatprep.subr.mxu0 %v4333_v0 }
 0xaf7   :  { %3904 = vmatpush3.msra.mxu0 %v4459_v40 }
 0xaf8   :  { %3919 = vmatprep.subr.mxu0 %v4333_v0 }
 0xba7   :  { %v1165_v18 = vpop.f32.mrf.mxu0 }
 0xba8   :  { %v1240_v20 = vpop.f32.mrf.mxu1 }
 0xba9   :  { %v1241_v21 = vadd.f32 %v1240_v20, %v1165_v18  ;;  %v3863_v22 = vpop.f32.mrf.mxu0 }
 0xbaa   :  { %v3874_v23 = vpop.f32.mrf.mxu1 }
 0xbab   :  { %v1244_v19 = vadd.f32 %v4514_v53, %v1241_v21 }
 0xbad   :  { %4213 = vtanh.f32 %v1244_v19  ;;  %v3486_v37 = vmul.f32 -1.442695, %v1244_v19 }
 0xbaf   :  { %v1335_v27 = vpop.f32.mrf.mxu0 }
 0xbb0   :  { %v1339_v29 = vadd.f32 %v1335_v27, %v168_v24 }
 0xbb1   :  { %v3885_v25 = vpop.f32.mrf.mxu0 }
 0xbb2   :  { %4215 = vtanh.f32 %v1339_v29  ;;  %v3488_v38 = vmul.f32 -1.442695, %v1339_v29 }
 0xbb3   :  { %4217 = vpow2.f32 %v3486_v37 }
 0xbb4   :  { %4219 = vpow2.f32 %v3488_v38 }
 0xbba   :  { %v4214_v32 = vpop.eup %4213 }
 0xbbb   :  { %1254 = vrot.lane.b32.xlu0 %v4214_v32, %s4335_s24 }
 0xbbf   :  { %v4216_v34 = vpop.eup %4215 }
 0xbc0   :  { %1349 = vrot.lane.b32.xlu1 %v4216_v34, %s4335_s24  ;;  %v4218_v39 = vpop.eup %4217 }
 0xbc1   :  { %v1248_v41 = vadd.f32 1.0, %v4218_v39  ;;  %v4220_v42 = vpop.eup %4219 }
 0xbc2   :  { %v1343_v43 = vadd.f32 1.0, %v4220_v42 }
 0xbc3   :  { %4221 = vrcp.f32 %v1248_v41 }
 0xbc4   :  { %4223 = vrcp.f32 %v1343_v43 }
 0xbd0   :  { %v4222_v49 = vpop.eup %4221 }
 0xbd1   :  { %v4224_v52 = vpop.eup %4223  ;;  %v1252_v55 = vmul.f32 %v4222_v49, %v4626_v5 }
 0xbd2   :  { %v1347_v58 = vmul.f32 %v4224_v52, %v4628_v6 }
 0xc2d   :  { %v1255_v44 = vpop.permute.xlu0 %1254 }
 0xc2e   :  { %v1257_v45 = vmul.f32 %v4222_v49, %v1255_v44 }
 0xc30   :  { %1259 = vrot.lane.b32.xlu0 %v1257_v45, %s4336_s25 }
 0xc32   :  { %v1350_v46 = vpop.permute.xlu1 %1349 }
 0xc33   :  { %v1352_v54 = vmul.f32 %v4224_v52, %v1350_v46 }
 0xc35   :  { %1354 = vrot.lane.b32.xlu1 %v1352_v54, %s4336_s25  ;;  %v4742_v54 = vld [vmem:[#allocation2 + $0x28] sm:$0xff] }
 0xca2   :  { %v1260_v56 = vpop.permute.xlu0 %1259 }
 0xca3   :  { %v4677_v57 = vadd.f32 %v1260_v56, %v1252_v55  ;;  %v4748_v55 = vld [vmem:[%s4970_s3] sm:$0xff] }
 0xca4   :  { %v4753_v56 = vld [vmem:[#allocation2 + $0x20] sm:$0xff] }
 0xca5   :  { %4225 = vtanh.f32 %v4677_v57 }
 0xca7   :  { %v1355_v59 = vpop.permute.xlu1 %1354 }
 0xca8   :  { %v4681_v60 = vadd.f32 %v1355_v59, %v1347_v58  ;;  %v4765_v58 = vld [vmem:[#allocation2 + $0x10] sm:$0xff] }
 0xca9   :  { %v4787_v59 = vld [vmem:[#allocation2 + $0x30] ss:$0 sm:$0xff] }
 0xcaa   :  { %4227 = vtanh.f32 %v4681_v60 }
 0xcb2   :  { %v4226_v61 = vpop.eup %4225 }
 0xcb3   :  { %1265 = vrot.lane.b32.xlu0 %v4226_v61, %s4335_s24 }
 0xcb7   :  { %v4228_v62 = vpop.eup %4227 }
 0xcb8   :  { %1360 = vrot.lane.b32.xlu1 %v4228_v62, %s4335_s24 }
 0xd25   :  { %v1266_v63 = vpop.permute.xlu0 %1265 }
 0xd26   :  { %v1268_v47 = vmul.f32 %v4222_v49, %v1266_v63 }
 0xd28   :  { %1365 = vrot.lane.b32.xlu0 %v1268_v47, %s4336_s25 }
 0xd2a   :  { %v1361_v1 = vpop.permute.xlu1 %1360 }
 0xd2b   :  { %v1363_v3 = vmul.f32 %v4224_v52, %v1361_v1 }
 0xd2d   :  { %1440 = vrot.lane.b32.xlu1 %v1363_v3, %s4336_s25 }
 0xd9a   :  { %v1366_v5 = vpop.permute.xlu0 %1365 }
 0xd9b   :  { %3895 = vmatmul.mubr.msk.f32.vlgmr.msra.gmra.mxu1 %vm186_vm2, %v1366_v5 }
 0xd9c   :  { %3909 = vmatpush3.msra.mxu1 %v4369_v2  ;;  %3916 = vmatprep.mubr.msk.f32.mxu1 %vm4334_vm0, %v4333_v0 }
 0xd9d   :  { %3910 = vmatprep.subr.mxu1 %v4333_v0 }
 0xd9e   :  { %3911 = vmatpush3.msra.mxu1 %v4372_v4 }
 0xd9f   :  { %3912 = vmatprep.subr.mxu1 %v4333_v0  ;;  %v1441_v6 = vpop.permute.xlu1 %1440 }
 0xda0   :  { %3913 = vmatpush3.msra.mxu1 %v4382_v7  ;;  %3906 = vmatmul.mubr.msk.f32.vlgmr.msra.gmra.mxu0 %vm186_vm2, %v1441_v6 }
 0xda1   :  { %3914 = vmatprep.subr.mxu1 %v4333_v0  ;;  %3920 = vmatpush3.msra.mxu0 %v4412_v28 }
 0xda2   :  { %3915 = vmatpush3.msra.mxu1 %v4387_v8  ;;  %3921 = vmatprep.subr.mxu0 %v4333_v0 }
 0xda3   :  { %3917 = vmatmul.mubr.msk.f32.vlgmr.msra.gmra.mxu1 %vm186_vm2, %v1441_v6  ;;  %3930 = vmatprep.subr.mxu1 %v4333_v0 }
 0xda4   :  { %3931 = vmatpush3.msra.mxu1 %v4407_v26  ;;  %3922 = vmatpush3.msra.mxu0 %v4419_v30 }
 0xda5   :  { %3932 = vmatprep.subr.mxu1 %v4333_v0  ;;  %3923 = vmatprep.subr.mxu0 %v4333_v0 }
 0xda6   :  { %3933 = vmatpush3.msra.mxu1 %v4421_v31  ;;  %3924 = vmatpush3.msra.mxu0 %v4430_v33 }
 0xda7   :  { %3934 = vmatprep.subr.mxu1 %v4333_v0  ;;  %3925 = vmatprep.subr.mxu0 %v4333_v0 }
 0xda8   :  { %3935 = vmatpush3.msra.mxu1 %v4441_v36  ;;  %3926 = vmatpush3.msra.mxu0 %v4439_v35 }
 0xda9   :  { %3936 = vmatprep.subr.mxu1 %v4333_v0  ;;  %3938 = vmatprep.mubr.msk.f32.mxu1 %vm4334_vm0, %v4333_v0 }
 0xdaa   :  { %3937 = vmatpush3.msra.mxu1 %v4459_v40  ;;  %3927 = vmatprep.mubr.msk.f32.mxu0 %vm4334_vm0, %v4333_v0 }
 0xdab   :  { %3941 = vmatprep.subr.mxu0 %v4333_v0  ;;  %3952 = vmatprep.subr.mxu1 %v4333_v0 }
 0xe5b   :  { %v1435_v2 = vpop.f32.mrf.mxu1 }
 0xe5d   :  { %v3896_v4 = vpop.f32.mrf.mxu1 }
 0xe60   :  { %v1510_v7 = vpop.f32.mrf.mxu0 }
 0xe61   :  { %v1511_v8 = vadd.f32 %v1510_v7, %v1435_v2 }
 0xe62   :  { %v3907_v11 = vpop.f32.mrf.mxu0 }
 0xe63   :  { %v1514_v12 = vadd.f32 %v4514_v53, %v1511_v8  ;;  %v1605_v13 = vpop.f32.mrf.mxu1 }
 0xe64   :  { %v1609_v14 = vadd.f32 %v1605_v13, %v173_v9 }
 0xe65   :  { %4229 = vtanh.f32 %v1514_v12  ;;  %v3918_v15 = vpop.f32.mrf.mxu1  ;;  %v3491_v0 = vmul.f32 -1.442695, %v1514_v12 }
 0xe66   :  { %4231 = vtanh.f32 %v1609_v14  ;;  %v3493_v18 = vmul.f32 -1.442695, %v1609_v14 }
 0xe67   :  { %4233 = vpow2.f32 %v3491_v0 }
 0xe68   :  { %4235 = vpow2.f32 %v3493_v18 }
 0xe72   :  { %v4230_v16 = vpop.eup %4229 }
 0xe73   :  { %v4232_v17 = vpop.eup %4231  ;;  %1524 = vrot.lane.b32.xlu0 %v4230_v16, %s4335_s24 }
 0xe74   :  { %1619 = vrot.lane.b32.xlu1 %v4232_v17, %s4335_s24  ;;  %v4234_v20 = vpop.eup %4233 }
 0xe75   :  { %v4236_v10 = vpop.eup %4235  ;;  %v1518_v48 = vadd.f32 1.0, %v4234_v20 }
 0xe76   :  { %v1613_v21 = vadd.f32 1.0, %v4236_v10 }
 0xe77   :  { %4237 = vrcp.f32 %v1518_v48 }
 0xe78   :  { %4239 = vrcp.f32 %v1613_v21 }
 0xe84   :  { %v4238_v22 = vpop.eup %4237 }
 0xe85   :  { %v4240_v19 = vpop.eup %4239  ;;  %v1522_v25 = vmul.f32 %v4238_v22, %v4677_v57  ;;  %v4759_v57 = vld [vmem:[#allocation2 + $0x18] sm:$0xff] }
 0xe86   :  { %v1617_v32 = vmul.f32 %v4240_v19, %v4681_v60  ;;  %v178_v60 = vadd.f32 %v4787_v59, %v4510_v51 }
 0xee5   :  { %v1525_v23 = vpop.permute.xlu0 %1524 }
 0xee6   :  { %v1620_v24 = vpop.permute.xlu1 %1619  ;;  %v1527_v27 = vmul.f32 %v4238_v22, %v1525_v23 }
 0xee7   :  { %v1622_v29 = vmul.f32 %v4240_v19, %v1620_v24  ;;  %v4300_v24 = vld [vmem:[#allocation2 + $0x50] sm:$0xff] }
 0xee8   :  { %1529 = vrot.lane.b32.xlu0 %v1527_v27, %s4336_s25  ;;  %v4301_v27 = vld [vmem:[#allocation2 + $0x68] sm:$0xff] }
 0xee9   :  { %1624 = vrot.lane.b32.xlu1 %v1622_v29, %s4336_s25  ;;  %v4302_v29 = vld [vmem:[#allocation2 + $0x48] sm:$0xff] }
 0xf5a   :  { %v1530_v34 = vpop.permute.xlu0 %1529 }
 0xf5b   :  { %v1625_v37 = vpop.permute.xlu1 %1624  ;;  %v4730_v38 = vadd.f32 %v1530_v34, %v1522_v25  ;;  %v4303_v25 = vld [vmem:[#allocation2 + $0x60] sm:$0xff]  ;;  %v4305_v34 = vld [vmem:[#allocation2 + $0x58] sm:$0xff] }
 0xf5c   :  { %v4732_v39 = vadd.f32 %v1625_v37, %v1617_v32  ;;  %v4304_v32 = vld [vmem:[#allocation2 + $0x40] sm:$0xff]  ;;  %v4306_v37 = vld [vmem:[#allocation2 + $0x38] sm:$0xff] }
 0xf5d   :  { %4241 = vtanh.f32 %v4730_v38 }
 0xf5e   :  { %4243 = vtanh.f32 %v4732_v39 }
 0xf6a   :  { %v4242_v41 = vpop.eup %4241 }
 0xf6b   :  { %v4244_v42 = vpop.eup %4243  ;;  %1535 = vrot.lane.b32.xlu0 %v4242_v41, %s4335_s24 }
 0xf6c   :  { %1630 = vrot.lane.b32.xlu1 %v4244_v42, %s4335_s24 }
 0xfdd   :  { %v1536_v43 = vpop.permute.xlu0 %1535 }
 0xfde   :  { %v1631_v49 = vpop.permute.xlu1 %1630  ;;  %v1538_v44 = vmul.f32 %v4238_v22, %v1536_v43  ;;  %v183_v43 = vadd.f32 %v4787_v59, %v4508_v50 }
 0xfdf   :  { %v1633_v45 = vmul.f32 %v4240_v19, %v1631_v49  ;;  %v4299_v19 = vld [vmem:[#allocation2 + $0x70] sm:$0xff] }
 0xfe0   :  { %1635 = vrot.lane.b32.xlu0 %v1538_v44, %s4336_s25 }
 0xfe1   :  { %1710 = vrot.lane.b32.xlu1 %v1633_v45, %s4336_s25 }
0x1052   :  { %v1636_v52 = vpop.permute.xlu0 %1635 }
0x1053   :  { %v1711_v46 = vpop.permute.xlu1 %1710  ;;  %3928 = vmatmul.mubr.msk.f32.vlgmr.msra.gmra.mxu0 %vm186_vm2, %v1636_v52 }
0x1054   :  { %3939 = vmatmul.mubr.msk.f32.vlgmr.msra.gmra.mxu1 %vm186_vm2, %v1711_v46  ;;  %3942 = vmatpush3.msra.mxu0 %v4742_v54 }
0x1055   :  { %3943 = vmatprep.subr.mxu0 %v4748_v55  ;;  %3949 = vmatprep.mubr.msk.f32.mxu0 %vm4334_vm0, %v4748_v55 }
0x1056   :  { %3944 = vmatpush3.msra.mxu0 %v4753_v56  ;;  %3953 = vmatpush3.msra.mxu1 %v4412_v28 }
0x1057   :  { %3945 = vmatprep.subr.mxu0 %v4748_v55  ;;  %3954 = vmatprep.subr.mxu1 %v4748_v55 }
0x1058   :  { %3946 = vmatpush3.msra.mxu0 %v4759_v57  ;;  %3955 = vmatpush3.msra.mxu1 %v4419_v30 }
0x1059   :  { %3947 = vmatprep.subr.mxu0 %v4748_v55  ;;  %3956 = vmatprep.subr.mxu1 %v4748_v55 }
0x105a   :  { %3948 = vmatpush3.msra.mxu0 %v4765_v58  ;;  %3957 = vmatpush3.msra.mxu1 %v4430_v33 }
0x105b   :  { %3950 = vmatmul.mubr.msk.f32.vlgmr.msra.gmra.mxu0 %vm186_vm2, %v1711_v46  ;;  %3958 = vmatprep.subr.mxu1 %v4748_v55 }
0x105c   :  { %3963 = vmatprep.subr.mxu0 %v4748_v55  ;;  %3959 = vmatpush3.msra.mxu1 %v4439_v35 }
0x105d   :  { %3964 = vmatpush3.msra.mxu0 %v4407_v26  ;;  %3960 = vmatprep.mubr.msk.f32.mxu1 %vm4334_vm0, %v4748_v55 }
0x105e   :  { %3965 = vmatprep.subr.mxu0 %v4748_v55  ;;  %3974 = vmatprep.subr.mxu1 %v4748_v55 }
0x105f   :  { %3966 = vmatpush3.msra.mxu0 %v4421_v31  ;;  %3971 = vmatprep.mubr.msk.f32.mxu0 %vm4334_vm0, %v4748_v55 }
0x1060   :  { %3967 = vmatprep.subr.mxu0 %v4748_v55 }
0x1061   :  { %3968 = vmatpush3.msra.mxu0 %v4441_v36 }
0x1062   :  { %3969 = vmatprep.subr.mxu0 %v4748_v55 }
0x1063   :  { %3970 = vmatpush3.msra.mxu0 %v4459_v40 }
0x1064   :  { %3985 = vmatprep.subr.mxu0 %v4748_v55 }
0x1113   :  { %v1705_v26 = vpop.f32.mrf.mxu0 }
0x1114   :  { %v1780_v28 = vpop.f32.mrf.mxu1 }
0x1115   :  { %v1781_v30 = vadd.f32 %v1780_v28, %v1705_v26  ;;  %v3929_v33 = vpop.f32.mrf.mxu0 }
0x1116   :  { %v3940_v35 = vpop.f32.mrf.mxu1 }
0x1117   :  { %v1784_v31 = vadd.f32 %v4514_v53, %v1781_v30 }
0x1119   :  { %4245 = vtanh.f32 %v1784_v31  ;;  %v3496_v47 = vmul.f32 -1.442695, %v1784_v31 }
0x111b   :  { %v1875_v36 = vpop.f32.mrf.mxu0 }
0x111c   :  { %v1879_v61 = vadd.f32 %v1875_v36, %v178_v60 }
0x111d   :  { %v3951_v62 = vpop.f32.mrf.mxu0 }
0x111e   :  { %4247 = vtanh.f32 %v1879_v61  ;;  %v3498_v1 = vmul.f32 -1.442695, %v1879_v61 }
0x111f   :  { %4249 = vpow2.f32 %v3496_v47 }
0x1120   :  { %4251 = vpow2.f32 %v3498_v1 }
0x1126   :  { %v4246_v40 = vpop.eup %4245 }
0x1127   :  { %1794 = vrot.lane.b32.xlu0 %v4246_v40, %s4335_s24 }
0x112b   :  { %v4248_v63 = vpop.eup %4247 }
0x112c   :  { %1889 = vrot.lane.b32.xlu1 %v4248_v63, %s4335_s24  ;;  %v4250_v3 = vpop.eup %4249 }
0x112d   :  { %v1788_v5 = vadd.f32 1.0, %v4250_v3  ;;  %v4252_v6 = vpop.eup %4251 }
0x112e   :  { %v1883_v2 = vadd.f32 1.0, %v4252_v6 }
0x112f   :  { %4253 = vrcp.f32 %v1788_v5 }
0x1130   :  { %4255 = vrcp.f32 %v1883_v2 }
0x113c   :  { %v4254_v51 = vpop.eup %4253 }
0x113d   :  { %v4256_v8 = vpop.eup %4255  ;;  %v1792_v12 = vmul.f32 %v4254_v51, %v4730_v38 }
0x113e   :  { %v1887_v15 = vmul.f32 %v4256_v8, %v4732_v39 }
0x1199   :  { %v1795_v4 = vpop.permute.xlu0 %1794 }
0x119a   :  { %v1797_v7 = vmul.f32 %v4254_v51, %v1795_v4 }
0x119c   :  { %1799 = vrot.lane.b32.xlu0 %v1797_v7, %s4336_s25 }
0x119e   :  { %v1890_v9 = vpop.permute.xlu1 %1889 }
0x119f   :  { %v1892_v11 = vmul.f32 %v4256_v8, %v1890_v9 }
0x11a1   :  { %1894 = vrot.lane.b32.xlu1 %v1892_v11, %s4336_s25 }
0x120e   :  { %v1800_v13 = vpop.permute.xlu0 %1799 }
0x120f   :  { %v4796_v14 = vadd.f32 %v1800_v13, %v1792_v12 }
0x1211   :  { %4257 = vtanh.f32 %v4796_v14 }
0x1213   :  { %v1895_v16 = vpop.permute.xlu1 %1894 }
0x1214   :  { %v4800_v17 = vadd.f32 %v1895_v16, %v1887_v15 }
0x1216   :  { %4259 = vtanh.f32 %v4800_v17 }
0x121e   :  { %v4258_v0 = vpop.eup %4257 }
0x121f   :  { %1805 = vrot.lane.b32.xlu0 %v4258_v0, %s4335_s24 }
0x1223   :  { %v4260_v18 = vpop.eup %4259 }
0x1224   :  { %1900 = vrot.lane.b32.xlu1 %v4260_v18, %s4335_s24 }
0x1291   :  { %v1806_v20 = vpop.permute.xlu0 %1805 }
0x1292   :  { %v1808_v10 = vmul.f32 %v4254_v51, %v1806_v20 }
0x1294   :  { %1905 = vrot.lane.b32.xlu0 %v1808_v10, %s4336_s25 }
0x1296   :  { %v1901_v48 = vpop.permute.xlu1 %1900 }
0x1297   :  { %v1903_v21 = vmul.f32 %v4256_v8, %v1901_v48 }
0x1299   :  { %1980 = vrot.lane.b32.xlu1 %v1903_v21, %s4336_s25 }
0x1306   :  { %v1906_v22 = vpop.permute.xlu0 %1905 }
0x1307   :  { %3961 = vmatmul.mubr.msk.f32.vlgmr.msra.gmra.mxu1 %vm186_vm2, %v1906_v22 }
0x1308   :  { %3975 = vmatpush3.msra.mxu1 %v4742_v54  ;;  %3982 = vmatprep.mubr.msk.f32.mxu1 %vm4334_vm0, %v4748_v55 }
0x1309   :  { %3976 = vmatprep.subr.mxu1 %v4748_v55 }
0x130a   :  { %3977 = vmatpush3.msra.mxu1 %v4753_v56 }
0x130b   :  { %3978 = vmatprep.subr.mxu1 %v4748_v55  ;;  %v1981_v23 = vpop.permute.xlu1 %1980 }
0x130c   :  { %3979 = vmatpush3.msra.mxu1 %v4759_v57  ;;  %3972 = vmatmul.mubr.msk.f32.vlgmr.msra.gmra.mxu0 %vm186_vm2, %v1981_v23 }
0x130d   :  { %3980 = vmatprep.subr.mxu1 %v4748_v55  ;;  %3986 = vmatpush3.msra.mxu0 %v4299_v19  ;;  %v2354_v19 = vld [vmem:[#allocation2 + $0xa0] sm:$0xf] }
0x130e   :  { %3981 = vmatpush3.msra.mxu1 %v4765_v58  ;;  %3987 = vmatprep.subr.mxu0 %v4748_v55 }
0x130f   :  { %3983 = vmatmul.mubr.msk.f32.vlgmr.msra.gmra.mxu1 %vm186_vm2, %v1981_v23  ;;  %3996 = vmatprep.subr.mxu1 %v4748_v55 }
0x1310   :  { %3997 = vmatpush3.msra.mxu1 %v4300_v24  ;;  %3988 = vmatpush3.msra.mxu0 %v4301_v27  ;;  %v4856_v24 = vld [vmem:[%s4968_s1] sm:$0xff]  ;;  %v2353_v27 = vld [vmem:[#allocation2 + $0x98] sm:$0xff]  ;;  %s4337_s1 = smov 4  }
0x1311   :  { %3998 = vmatprep.subr.mxu1 %v4748_v55  ;;  %3989 = vmatprep.subr.mxu0 %v4748_v55 }
0x1312   :  { %3999 = vmatpush3.msra.mxu1 %v4302_v29  ;;  %3990 = vmatpush3.msra.mxu0 %v4303_v25  ;;  %v2352_v29 = vld [vmem:[#allocation2 + $0x90] sm:$0xff]  ;;  %v2351_v25 = vld [vmem:[#allocation2 + $0x88] sm:$0xff] }
0x1313   :  { %4000 = vmatprep.subr.mxu1 %v4748_v55  ;;  %3991 = vmatprep.subr.mxu0 %v4748_v55 }
0x1314   :  { %4001 = vmatpush3.msra.mxu1 %v4304_v32  ;;  %4004 = vmatprep.mubr.msk.f32.mxu1 %vm4334_vm0, %v4748_v55  ;;  %v2350_v32 = vld [vmem:[#allocation2 + $0x80] sm:$0xff] }
0x1315   :  { %4002 = vmatprep.subr.mxu1 %v4748_v55  ;;  %3992 = vmatpush3.msra.mxu0 %v4305_v34 }
0x1316   :  { %4003 = vmatpush3.msra.mxu1 %v4306_v37  ;;  %3993 = vmatprep.mubr.msk.f32.mxu0 %vm4334_vm0, %v4748_v55  ;;  %v2524_v37 = vld [vmem:[#allocation2 + $0xe8] sm:$0xff] }
0x1317   :  { %4007 = vmatprep.subr.mxu0 %v4748_v55  ;;  %4023 = vmatprep.subr.mxu1 %v4748_v55 }
0x13c7   :  { %v1975_v38 = vpop.f32.mrf.mxu1 }
0x13c9   :  { %v3962_v39 = vpop.f32.mrf.mxu1 }
0x13ca   :  { %v2522_v39 = vld [vmem:[#allocation2 + $0xd8] sm:$0xff] }
0x13cc   :  { %v2050_v41 = vpop.f32.mrf.mxu0 }
0x13cd   :  { %v2051_v42 = vadd.f32 %v2050_v41, %v1975_v38  ;;  %v2523_v38 = vld [vmem:[#allocation2 + $0xe0] sm:$0xff]  ;;  %v2521_v41 = vld [vmem:[#allocation2 + $0xd0] sm:$0xff] }
0x13ce   :  { %v3973_v49 = vpop.f32.mrf.mxu0 }
0x13cf   :  { %v2054_v44 = vadd.f32 %v4514_v53, %v2051_v42  ;;  %v2145_v45 = vpop.f32.mrf.mxu1 }
0x13d0   :  { %v2149_v52 = vadd.f32 %v2145_v45, %v183_v43 }
0x13d1   :  { %4261 = vtanh.f32 %v2054_v44  ;;  %v3984_v46 = vpop.f32.mrf.mxu1  ;;  %v3501_v57 = vmul.f32 -1.442695, %v2054_v44 }
0x13d2   :  { %4263 = vtanh.f32 %v2149_v52  ;;  %v3503_v58 = vmul.f32 -1.442695, %v2149_v52  ;;  %v2520_v52 = vld [vmem:[#allocation2 + $0xc8] sm:$0xff]  ;;  %v2519_v46 = vld [vmem:[#allocation2 + $0xc0] sm:$0xff] }
0x13d3   :  { %4265 = vpow2.f32 %v3501_v57  ;;  %v2610_v57 = vld [vmem:[#allocation2 + $0x110] sm:$0xff] }
0x13d4   :  { %4267 = vpow2.f32 %v3503_v58 }
0x13de   :  { %v4262_v54 = vpop.eup %4261 }
0x13df   :  { %v4264_v56 = vpop.eup %4263  ;;  %2064 = vrot.lane.b32.xlu0 %v4262_v54, %s4335_s24  ;;  %v2518_v54 = vld [vmem:[#allocation2 + $0xb8] sm:$0xff] }
0x13e0   :  { %2159 = vrot.lane.b32.xlu1 %v4264_v56, %s4335_s24  ;;  %v4266_v26 = vpop.eup %4265  ;;  %v2517_v56 = vld [vmem:[#allocation2 + $0xb0] sm:$0xff] }
0x13e1   :  { %v4268_v50 = vpop.eup %4267  ;;  %v2058_v28 = vadd.f32 1.0, %v4266_v26  ;;  %v3510_v26 = vld [vmem:[#allocation2 + $0xa8] ss:$0 sm:$0xff] }
0x13e2   :  { %v2153_v30 = vadd.f32 1.0, %v4268_v50 }
0x13e3   :  { %4269 = vrcp.f32 %v2058_v28 }
0x13e4   :  { %4271 = vrcp.f32 %v2153_v30 }
0x13f0   :  { %v4270_v53 = vpop.eup %4269 }
0x13f1   :  { %v4272_v35 = vpop.eup %4271  ;;  %v2062_v36 = vmul.f32 %v4270_v53, %v4796_v14  ;;  %v4307_v14 = vld [vmem:[#allocation2 + $0x78] ss:$0 sm:$0xff] }
0x13f2   :  { %v2157_v61 = vmul.f32 %v4272_v35, %v4800_v17 }
0x1451   :  { %v2065_v33 = vpop.permute.xlu0 %2064 }
0x1452   :  { %v2160_v31 = vpop.permute.xlu1 %2159  ;;  %v2067_v59 = vmul.f32 %v4270_v53, %v2065_v33 }
0x1453   :  { %v2162_v60 = vmul.f32 %v4272_v35, %v2160_v31  ;;  %v2608_v31 = vld [vmem:[#allocation2 + $0x100] sm:$0xff] }
0x1454   :  { %2069 = vrot.lane.b32.xlu0 %v2067_v59, %s4336_s25  ;;  %v2607_v59 = vld [vmem:[#allocation2 + $0xf8] sm:$0xff] }
0x1455   :  { %2164 = vrot.lane.b32.xlu1 %v2162_v60, %s4336_s25  ;;  %v3511_v60 = vld [vmem:[#allocation2 + $0xf0] ss:$0 sm:$0xff] }
0x14c6   :  { %v2070_v62 = vpop.permute.xlu0 %2069 }
0x14c7   :  { %v2165_v40 = vpop.permute.xlu1 %2164  ;;  %v2072_v63 = vadd.f32 %v2070_v62, %v2062_v36 }
0x14c8   :  { %v2167_v47 = vadd.f32 %v2165_v40, %v2157_v61 }
0x14c9   :  { %4273 = vtanh.f32 %v2072_v63 }
0x14ca   :  { %4275 = vtanh.f32 %v2167_v47  ;;  %v2693_v47 = vld [vmem:[#allocation2 + $0x128] sm:$0xff] }
0x14d6   :  { %v4274_v1 = vpop.eup %4273 }
0x14d7   :  { %v4276_v3 = vpop.eup %4275  ;;  %2075 = vrot.lane.b32.xlu0 %v4274_v1, %s4335_s24  ;;  %v2692_v1 = vld [vmem:[#allocation2 + $0x120] sm:$0xff] }
0x14d8   :  { %2170 = vrot.lane.b32.xlu1 %v4276_v3, %s4335_s24  ;;  %v2787_v3 = vld [vmem:[#allocation2 + $0x158] sm:$0xf] }
0x1549   :  { %v2076_v5 = vpop.permute.xlu0 %2075 }
0x154a   :  { %v2171_v6 = vpop.permute.xlu1 %2170  ;;  %v2078_v2 = vmul.f32 %v4270_v53, %v2076_v5  ;;  %v2947_v5 = vld [vmem:[#allocation2 + $0x1a0] sm:$0xff] }
0x154b   :  { %v2173_v51 = vmul.f32 %v4272_v35, %v2171_v6  ;;  %v2609_v35 = vld [vmem:[#allocation2 + $0x108] sm:$0xff]  ;;  %v3513_v6 = vld [vmem:[#allocation2 + $0x118] ss:$0 sm:$0xff] }
0x154c   :  { %2175 = vrot.lane.b32.xlu0 %v2078_v2, %s4336_s25 }
0x154d   :  { %2250 = vrot.lane.b32.xlu1 %v2173_v51, %s4336_s25 }
0x15be   :  { %v2176_v4 = vpop.permute.xlu0 %2175 }
0x15bf   :  { %v2251_v7 = vpop.permute.xlu1 %2250  ;;  %3994 = vmatmul.mubr.msk.f32.vlgmr.msra.gmra.mxu0 %vm186_vm2, %v2176_v4 }
0x15c0   :  { %4005 = vmatmul.mubr.msk.f32.vlgmr.msra.gmra.mxu1 %vm186_vm2, %v2251_v7  ;;  %4009 = vmatprep.mubr.msk.f32.mxu0 %vm4334_vm0, %v4748_v55 }
0x15c1   :  { %4039 = vmatprep.mubr.msk.f32.mxu1 %vm4334_vm0, %v4748_v55  ;;  %4008 = vmatpush3.msk.msra.mxu0 %vm2359_vm3, %v2354_v19  ;;  %v2941_v19 = vld [vmem:[#allocation2 + $0x170] sm:$0xff] }
0x15c2   :  { %4012 = vmatprep.subr.mxu0 %v4748_v55  ;;  %4024 = vmatpush3.msra.mxu1 %v2524_v37 }
0x15c3   :  { %4010 = vmatmul.mubr.msk.f32.vlgmr.msra.gmra.mxu0 %vm2355_vm4, %v4856_v24  ;;  %4025 = vmatprep.subr.mxu1 %v4748_v55 }
0x15c4   :  { %4013 = vmatpush3.msra.mxu0 %v2353_v27  ;;  %4020 = vmatprep.mubr.msk.f32.mxu0 %vm4334_vm0, %v4748_v55  ;;  %v3515_v27 = vld [vmem:[#allocation2 + $0x130] ss:$0 sm:$0xff] }
0x15c5   :  { %4014 = vmatprep.subr.mxu0 %v4748_v55  ;;  %4026 = vmatpush3.msra.mxu1 %v2523_v38  ;;  %v3520_v38 = vld [vmem:[#allocation2 + $0x160] ss:$0 sm:$0xff] }
0x15c6   :  { %4015 = vmatpush3.msra.mxu0 %v2352_v29  ;;  %4027 = vmatprep.subr.mxu1 %v4748_v55 }
0x15c7   :  { %4016 = vmatprep.subr.mxu0 %v4748_v55  ;;  %4028 = vmatpush3.msra.mxu1 %v2522_v39 }
0x15c8   :  { %4017 = vmatpush3.msra.mxu0 %v2351_v25  ;;  %4029 = vmatprep.subr.mxu1 %v4748_v55 }
0x15c9   :  { %4018 = vmatprep.subr.mxu0 %v4748_v55  ;;  %4030 = vmatpush3.msra.mxu1 %v2521_v41 }
0x15ca   :  { %4019 = vmatpush3.msra.mxu0 %v2350_v32  ;;  %4031 = vmatprep.subr.mxu1 %v4748_v55 }
0x15cb   :  { %4042 = vmatprep.subr.mxu0 %v4748_v55  ;;  %4032 = vmatpush3.msra.mxu1 %v2520_v52 }
0x15cc   :  { %4033 = vmatprep.subr.mxu1 %v4748_v55 }
0x15cd   :  { %4034 = vmatpush3.msra.mxu1 %v2519_v46  ;;  %v3190_v46 = vld [vmem:[#allocation2 + $0x210] sm:$0xff] }
0x15ce   :  { %4035 = vmatprep.subr.mxu1 %v4748_v55 }
0x15cf   :  { %4036 = vmatpush3.msra.mxu1 %v2518_v54  ;;  %v3189_v54 = vld [vmem:[#allocation2 + $0x208] sm:$0xff] }
0x15d0   :  { %4037 = vmatprep.subr.mxu1 %v4748_v55 }
0x15d1   :  { %4038 = vmatpush3.msra.mxu1 %v2517_v56 }
0x15d2   :  { %4060 = vmatprep.subr.mxu1 %v4748_v55 }
0x167f   :  { %v2245_v8 = vpop.f32.mrf.mxu0 }
0x1680   :  { %v2320_v9 = vpop.f32.mrf.mxu1 }
0x1681   :  { %v2321_v11 = vadd.f32 %v2320_v9, %v2245_v8  ;;  %v3995_v12 = vpop.f32.mrf.mxu0  ;;  %v2786_v8 = vld [vmem:[#allocation2 + $0x150] sm:$0xff] }
0x1682   :  { %v4006_v13 = vpop.f32.mrf.mxu1  ;;  %v2784_v12 = vld [vmem:[#allocation2 + $0x140] sm:$0xff] }
0x1683   :  { %v2324_v15 = vadd.f32 %v4307_v14, %v2321_v11  ;;  %v2429_v49 = vpop.f32.mrf.mxu0  ;;  %v2785_v11 = vld [vmem:[#allocation2 + $0x148] sm:$0xff]  ;;  %v2783_v13 = vld [vmem:[#allocation2 + $0x138] sm:$0xff]  ;;  %v3031_v14 = vld [vmem:[#allocation2 + $0x1d0] sm:$0xf] }
0x1685   :  { %4277 = vtanh.f32 %v2324_v15  ;;  %v3506_v17 = vmul.f32 -1.442695, %v2324_v15  ;;  %v4011_v44 = vpop.f32.mrf.mxu0  ;;  %v3030_v15 = vld [vmem:[#allocation2 + $0x1c8] sm:$0xff] }
0x1687   :  { %4279 = vpow2.f32 %v3506_v17  ;;  %v3028_v17 = vld [vmem:[#allocation2 + $0x1b8] sm:$0xff] }
0x1692   :  { %v4278_v16 = vpop.eup %4277 }
0x1693   :  { %2334 = vrot.lane.b32.xlu0 %v4278_v16, %s4335_s24  ;;  %v3029_v16 = vld [vmem:[#allocation2 + $0x1c0] sm:$0xff] }
0x1694   :  { %v4280_v0 = vpop.eup %4279 }
0x1695   :  { %v2328_v18 = vadd.f32 1.0, %v4280_v0  ;;  %v3027_v0 = vld [vmem:[#allocation2 + $0x1b0] sm:$0xff] }
0x1697   :  { %4281 = vrcp.f32 %v2328_v18  ;;  %v2946_v18 = vld [vmem:[#allocation2 + $0x198] sm:$0xff] }
0x16a4   :  { %v4282_v20 = vpop.eup %4281 }
0x16a5   :  { %v2332_v21 = vmul.f32 %v4282_v20, %v2072_v63 }
0x1705   :  { %v2335_v10 = vpop.permute.xlu0 %2334 }
0x1706   :  { %v2337_v48 = vmul.f32 %v4282_v20, %v2335_v10  ;;  %v2944_v10 = vld [vmem:[#allocation2 + $0x188] sm:$0xff] }
0x1708   :  { %2339 = vrot.lane.b32.xlu1 %v2337_v48, %s4336_s25 }
0x177a   :  { %v2340_v22 = vpop.permute.xlu1 %2339 }
0x177b   :  { %v2342_v23 = vadd.f32 %v2340_v22, %v2332_v21  ;;  %v2943_v22 = vld [vmem:[#allocation2 + $0x180] sm:$0xff] }
0x177d   :  { %4283 = vtanh.f32 %v2342_v23  ;;  %v2942_v23 = vld [vmem:[#allocation2 + $0x178] sm:$0xff] }
0x178a   :  { %v4284_v34 = vpop.eup %4283 }
0x178b   :  { %2345 = vrot.lane.b32.xlu0 %v4284_v34, %s4335_s24 }
0x17fd   :  { %v2346_v42 = vpop.permute.xlu0 %2345 }
0x17fe   :  { %v2348_v43 = vmul.f32 %v4282_v20, %v2346_v42  ;;  %v2945_v20 = vld [vmem:[#allocation2 + $0x190] sm:$0xff] }
0x1800   :  { %2434 = vrot.lane.b32.xlu1 %v2348_v43, %s4336_s25 }
0x1872   :  { %v4874_v45 = vpop.permute.xlu1 %2434 }
0x1873   :  { %4021 = vmatmul.mubr.msk.f32.vlgmr.msra.gmra.mxu0 %vm186_vm2, %v4874_v45 }
0x1874   :  { %4050 = vmatprep.mubr.msk.f32.mxu0 %vm4334_vm0, %v4748_v55  ;;  %4043 = vmatpush3.msra.mxu0 %v2610_v57  ;;  %v3526_v57 = vld [vmem:[#allocation2 + $0x1d8] ss:$0 sm:$0xff] }
0x1875   :  { %4044 = vmatprep.subr.mxu0 %v4748_v55 }
0x1876   :  { %4045 = vmatpush3.msra.mxu0 %v2609_v35 }
0x1877   :  { %4046 = vmatprep.subr.mxu0 %v4748_v55 }
0x1878   :  { %4047 = vmatpush3.msra.mxu0 %v2608_v31  ;;  %v3184_v31 = vld [vmem:[#allocation2 + $0x1e0] sm:$0xff] }
0x1879   :  { %4048 = vmatprep.subr.mxu0 %v4748_v55 }
0x187a   :  { %4049 = vmatpush3.msra.mxu0 %v2607_v59 }
0x187b   :  { %4053 = vmatprep.subr.mxu0 %v4748_v55 }
0x1933   :  { %v2504_v58 = vpop.f32.mrf.mxu0 }
0x1934   :  { %v2505_v50 = vadd.f32 %v2504_v58, %v2429_v49  ;;  %v3188_v58 = vld [vmem:[#allocation2 + $0x200] sm:$0xff] }
0x1935   :  { %v4022_v28 = vpop.f32.mrf.mxu0 }
0x1936   :  { %v2513_v30 = vadd.f32 %v3510_v26, %v2505_v50  ;;  %v3187_v28 = vld [vmem:[#allocation2 + $0x1f8] sm:$0xff] }
0x1938   :  { %vm2514_vm5 = vcmp.gt.f32.partialorder %v2513_v30, 0.0  ;;  %v2515_v53 = vmul.f32 0.01, %v2513_v30 }
0x193a   :  { %v2516_v33 = vsel %vm2514_vm5, %v2513_v30, %v2515_v53  ;;  %v3186_v53 = vld [vmem:[#allocation2 + $0x1f0] sm:$0xff] }
0x193b   :  { %4040 = vmatmul.mubr.msk.f32.vlgmr.msra.gmra.mxu1 %vm2530_vm6, %v2516_v33  ;;  %v3185_v33 = vld [vmem:[#allocation2 + $0x1e8] sm:$0xff] }
0x193c   :  { %4062 = vmatprep.mubr.msk.f32.mxu1 %vm4334_vm0, %v4748_v55  ;;  %4061 = vmatpush3.msk.msra.mxu1 %vm2359_vm3, %v2787_v3 }
0x193d   :  { %4076 = vmatprep.subr.mxu1 %v4748_v55 }
0x193f   :  { %4063 = vmatmul.mubr.msk.f32.vlgmr.msra.gmra.mxu1 %vm2355_vm4, %v4856_v24 }
0x1940   :  { %4092 = vmatprep.mubr.msk.f32.mxu1 %vm4334_vm0, %v4748_v55  ;;  %4077 = vmatpush3.msra.mxu1 %v2947_v5  ;;  %v3521_v5 = vld [vmem:[#allocation2 + $0x1a8] ss:$0 sm:$0xff] }
0x1941   :  { %4078 = vmatprep.subr.mxu1 %v4748_v55 }
0x1942   :  { %4079 = vmatpush3.msra.mxu1 %v2946_v18 }
0x1943   :  { %4080 = vmatprep.subr.mxu1 %v4748_v55 }
0x1944   :  { %4081 = vmatpush3.msra.mxu1 %v2945_v20  ;;  %v3529_v20 = vld [vmem:[#allocation2 + $0x248] ss:$0 sm:$0xff] }
0x1945   :  { %4082 = vmatprep.subr.mxu1 %v4748_v55 }
0x1946   :  { %4083 = vmatpush3.msra.mxu1 %v2944_v10 }
0x1947   :  { %4084 = vmatprep.subr.mxu1 %v4748_v55 }
0x1948   :  { %4085 = vmatpush3.msra.mxu1 %v2943_v22 }
0x1949   :  { %4086 = vmatprep.subr.mxu1 %v4748_v55 }
0x194a   :  { %4087 = vmatpush3.msra.mxu1 %v2942_v23  ;;  %v3531_v23 = vld [vmem:[#allocation2 + $0x260] ss:$0 sm:$0xff] }
0x194b   :  { %4088 = vmatprep.subr.mxu1 %v4748_v55 }
0x194c   :  { %4089 = vmatpush3.msra.mxu1 %v2941_v19 }
0x194d   :  { %4090 = vmatprep.subr.mxu1 %v4748_v55 }
0x19fb   :  { %v2600_v36 = vpop.f32.mrf.mxu1 }
0x19fc   :  { %v2601_v61 = vadd.f32 %v3511_v60, %v2600_v36  ;;  %v3276_v60 = vld [vmem:[#allocation2 + $0x240] sm:$0xff]  ;;  %v3275_v36 = vld [vmem:[#allocation2 + $0x238] sm:$0xff] }
0x19fd   :  { %v4041_v62 = vpop.f32.mrf.mxu1 }
0x19fe   :  { %vm2604_vm7 = vcmp.gt.f32.partialorder %v2601_v61, 0.0  ;;  %v2605_v40 = vmul.f32 0.01, %v2601_v61  ;;  %v3273_v62 = vld [vmem:[#allocation2 + $0x228] sm:$0xff] }
0x19ff   :  { %v2857_v48 = vpop.f32.mrf.mxu1 }
0x1a00   :  { %v2606_v63 = vsel %vm2604_vm7, %v2601_v61, %v2605_v40  ;;  %v3274_v61 = vld [vmem:[#allocation2 + $0x230] sm:$0xff] }
0x1a01   :  { %4051 = vmatmul.mubr.msk.f32.vlgmr.msra.gmra.mxu0 %vm186_vm2, %v2606_v63  ;;  %v4064_v21 = vpop.f32.mrf.mxu1 }
0x1a02   :  { %4057 = vmatprep.mubr.msk.f32.mxu0 %vm4334_vm0, %v4748_v55  ;;  %4054 = vmatpush3.msra.mxu0 %v2693_v47 }
0x1a03   :  { %4055 = vmatprep.subr.mxu0 %v4748_v55 }
0x1a04   :  { %4056 = vmatpush3.msra.mxu0 %v2692_v1 }
0x1a05   :  { %4065 = vmatprep.subr.mxu0 %v4748_v55 }
0x1ac1   :  { %v2685_v2 = vpop.f32.mrf.mxu0 }
0x1ac2   :  { %v2686_v51 = vadd.f32 %v3513_v6, %v2685_v2 }
0x1ac3   :  { %v4052_v4 = vpop.f32.mrf.mxu0 }
0x1ac4   :  { %vm2689_vm8 = vcmp.gt.f32.partialorder %v2686_v51, 0.0  ;;  %v2690_v7 = vmul.f32 0.01, %v2686_v51  ;;  %v3527_v4 = vld [vmem:[#allocation2 + $0x220] ss:$0 sm:$0xff] }
0x1ac6   :  { %v2691_v9 = vsel %vm2689_vm8, %v2686_v51, %v2690_v7 }
0x1ac7   :  { %4058 = vmatmul.mubr.msk.f32.vlgmr.msra.gmra.mxu0 %vm56_vm1, %v2691_v9 }
0x1ac8   :  { %4066 = vmatpush3.msra.mxu0 %v2786_v8  ;;  %4073 = vmatprep.mubr.msk.f32.mxu0 %vm4334_vm0, %v4748_v55 }
0x1ac9   :  { %4067 = vmatprep.subr.mxu0 %v4748_v55 }
0x1aca   :  { %4068 = vmatpush3.msra.mxu0 %v2785_v11 }
0x1acb   :  { %4069 = vmatprep.subr.mxu0 %v4748_v55 }
0x1acc   :  { %4070 = vmatpush3.msra.mxu0 %v2784_v12 }
0x1acd   :  { %4071 = vmatprep.subr.mxu0 %v4748_v55 }
0x1ace   :  { %4072 = vmatpush3.msra.mxu0 %v2783_v13 }
0x1acf   :  { %4074 = vmatmul.mubr.msk.f32.vlgmr.msra.gmra.mxu0 %vm186_vm2, %v4874_v45  ;;  %4095 = vmatprep.subr.mxu0 %v4748_v55 }
0x1ad0   :  { %4096 = vmatpush3.msk.msra.mxu0 %vm2359_vm3, %v3031_v14  ;;  %4097 = vmatprep.mubr.msk.f32.mxu0 %vm4334_vm0, %v4748_v55  ;;  %v3359_v14 = vld [vmem:[#allocation2 + $0x258] sm:$0xff] }
0x1ad1   :  { %4100 = vmatprep.subr.mxu0 %v4748_v55 }
0x1ad3   :  { %4098 = vmatmul.mubr.msk.f32.vlgmr.msra.gmra.mxu0 %vm2355_vm4, %v4856_v24  ;;  %v2940_v24 = vld [vmem:[#allocation2 + $0x168] sm:$0xff] }
0x1ad4   :  { %4101 = vmatpush3.msra.mxu0 %v3030_v15  ;;  %4108 = vmatprep.mubr.msk.f32.mxu0 %vm4334_vm0, %v4748_v55 }
0x1ad5   :  { %4102 = vmatprep.subr.mxu0 %v4748_v55  ;;  %4091 = vmatpush3.msra.mxu1 %v2940_v24 }
0x1ad6   :  { %4103 = vmatpush3.msra.mxu0 %v3029_v16  ;;  %4111 = vmatprep.subr.mxu1 %v4748_v55  ;;  %v3358_v16 = vld [vmem:[#allocation2 + $0x250] sm:$0xff] }
0x1ad7   :  { %4104 = vmatprep.subr.mxu0 %v4748_v55 }
0x1ad8   :  { %4105 = vmatpush3.msra.mxu0 %v3028_v17 }
0x1ad9   :  { %4106 = vmatprep.subr.mxu0 %v4748_v55 }
0x1ada   :  { %4107 = vmatpush3.msra.mxu0 %v3027_v0 }
0x1adb   :  { %4109 = vmatmul.mubr.msk.f32.vlgmr.msra.gmra.mxu0 %vm186_vm2, %v4874_v45  ;;  %4130 = vmatprep.subr.mxu0 %v4748_v55  ;;  %v3191_v45 = vld [vmem:[#allocation2 + $0x218] sm:$0xff] }
0x1adc   :  { %4138 = vmatprep.mubr.msk.f32.mxu0 %vm4334_vm0, %v4748_v55  ;;  %4131 = vmatpush3.msra.mxu0 %v3276_v60 }
0x1add   :  { %4132 = vmatprep.subr.mxu0 %v4748_v55 }
0x1ade   :  { %4133 = vmatpush3.msra.mxu0 %v3275_v36 }
0x1adf   :  { %4134 = vmatprep.subr.mxu0 %v4748_v55 }
0x1ae0   :  { %4135 = vmatpush3.msra.mxu0 %v3274_v61 }
0x1ae1   :  { %4136 = vmatprep.subr.mxu0 %v4748_v55 }
0x1ae2   :  { %4137 = vmatpush3.msra.mxu0 %v3273_v62 }
0x1ae3   :  { %4141 = vmatprep.subr.mxu0 %v4748_v55 }
0x1b87   :  { %v2768_v29 = vpop.f32.mrf.mxu0 }
0x1b88   :  { %v2769_v25 = vadd.f32 %v3515_v27, %v2768_v29 }
0x1b89   :  { %v4059_v32 = vpop.f32.mrf.mxu0 }
0x1b8a   :  { %v2772_v34 = vsel %vm2355_vm4, %v2769_v25, -inf }
0x1b8b   :  { %2773 = vmax.xlane.f32.xlu0 %v2772_v34 }
0x1b8f   :  { %v2927_v37 = vpop.f32.mrf.mxu0 }
0x1b90   :  { %v2928_v39 = vadd.f32 %v2927_v37, %v2857_v48 }
0x1b91   :  { %v4075_v41 = vpop.f32.mrf.mxu0 }
0x1b92   :  { %v2936_v42 = vadd.f32 %v3520_v38, %v2928_v39 }
0x1b93   :  { %v3101_v43 = vpop.f32.mrf.mxu0 }
0x1b94   :  { %vm2937_vm9 = vcmp.gt.f32.partialorder %v2936_v42, 0.0  ;;  %v2938_v49 = vmul.f32 0.01, %v2936_v42 }
0x1b95   :  { %v4099_v44 = vpop.f32.mrf.mxu0 }
0x1b96   :  { %v2939_v52 = vsel %vm2937_vm9, %v2936_v42, %v2938_v49 }
0x1b97   :  { %4093 = vmatmul.mubr.msk.f32.vlgmr.msra.gmra.mxu1 %vm2530_vm6, %v2939_v52 }
0x1b98   :  { %4112 = vmatpush3.msra.mxu1 %v3191_v45  ;;  %4127 = vmatprep.mubr.msk.f32.mxu1 %vm4334_vm0, %v4748_v55 }
0x1b99   :  { %4113 = vmatprep.subr.mxu1 %v4748_v55 }
0x1b9a   :  { %4114 = vmatpush3.msra.mxu1 %v3190_v46 }
0x1b9b   :  { %v3171_v56 = vpop.f32.mrf.mxu0  ;;  %4115 = vmatprep.subr.mxu1 %v4748_v55 }
0x1b9c   :  { %v3172_v26 = vadd.f32 %v3171_v56, %v3101_v43  ;;  %4116 = vmatpush3.msra.mxu1 %v3189_v54 }
0x1b9d   :  { %v4110_v50 = vpop.f32.mrf.mxu0  ;;  %4117 = vmatprep.subr.mxu1 %v4748_v55 }
0x1b9e   :  { %v3180_v30 = vadd.f32 %v3526_v57, %v3172_v26  ;;  %4118 = vmatpush3.msra.mxu1 %v3188_v58 }
0x1b9f   :  { %4119 = vmatprep.subr.mxu1 %v4748_v55 }
0x1ba0   :  { %4120 = vmatpush3.msra.mxu1 %v3187_v28  ;;  %v3182_v35 = vmul.f32 0.01, %v3180_v30  ;;  %vm3181_vm10 = vcmp.gt.f32.partialorder %v3180_v30, 0.0 }
0x1ba1   :  { %4121 = vmatprep.subr.mxu1 %v4748_v55 }
0x1ba2   :  { %4122 = vmatpush3.msra.mxu1 %v3186_v53  ;;  %v3183_v59 = vsel %vm3181_vm10, %v3180_v30, %v3182_v35 }
0x1ba3   :  { %4123 = vmatprep.subr.mxu1 %v4748_v55 }
0x1ba4   :  { %4124 = vmatpush3.msra.mxu1 %v3185_v33 }
0x1ba5   :  { %4125 = vmatprep.subr.mxu1 %v4748_v55 }
0x1ba6   :  { %4126 = vmatpush3.msra.mxu1 %v3184_v31 }
0x1ba7   :  { %4128 = vmatmul.mubr.msk.f32.vlgmr.msra.gmra.mxu1 %vm2530_vm6, %v3183_v59 }
0x1c14   :  { %v2774_v40 = vpop.xlane.xlu0 %2773 }
0x1c15   :  { %v2775_v63 = vsub.f32 %v2769_v25, %v2774_v40 }
0x1c17   :  { %v2776_v47 = vmul.f32 1.442695, %v2775_v63 }
0x1c19   :  { %4285 = vpow2.f32 %v2776_v47 }
0x1c26   :  { %v4286_v1 = vpop.eup %4285 }
0x1c27   :  { %v2778_v3 = vsel %vm2355_vm4, %v4286_v1, 0.0 }
0x1c28   :  { %2779 = vadd.xlane.f32.xlu1 %v2778_v3 }
0x1c57   :  { %v3022_v6 = vpop.f32.mrf.mxu1 }
0x1c58   :  { %v3023_v2 = vadd.f32 %v3521_v5, %v3022_v6 }
0x1c59   :  { %v4094_v51 = vpop.f32.mrf.mxu1 }
0x1c5a   :  { %4287 = vtanh.f32 %v3023_v2 }
0x1c67   :  { %v4288_v7 = vpop.eup %4287  ;;  %v3266_v8 = vpop.f32.mrf.mxu1 }
0x1c68   :  { %v3267_v9 = vadd.f32 %v3527_v4, %v3266_v8  ;;  %3443 = vrot.lane.b32.xlu0 %v4288_v7, %s4337_s1 }
0x1c69   :  { %v4129_v11 = vpop.f32.mrf.mxu1 }
0x1c6a   :  { %vm3270_vm11 = vcmp.gt.f32.partialorder %v3267_v9, 0.0  ;;  %v3271_v12 = vmul.f32 0.01, %v3267_v9 }
0x1c6c   :  { %v3272_v13 = vsel %vm3270_vm11, %v3267_v9, %v3271_v12 }
0x1c6d   :  { %4139 = vmatmul.mubr.msk.f32.vlgmr.msra.gmra.mxu0 %vm186_vm2, %v3272_v13 }
0x1c6e   :  { %4145 = vmatprep.mubr.msk.f32.mxu0 %vm4334_vm0, %v4748_v55  ;;  %4142 = vmatpush3.msra.mxu0 %v3359_v14 }
0x1c6f   :  { %4143 = vmatprep.subr.mxu0 %v4748_v55 }
0x1c70   :  { %4144 = vmatpush3.msra.mxu0 %v3358_v16 }
0x1cb1   :  { %v2780_v15 = vpop.xlane.xlu1 %2779 }
0x1cb2   :  { %4289 = vrcp.f32 %v2780_v15 }
0x1cbf   :  { %v4290_v17 = vpop.eup %4289 }
0x1cc0   :  { %v2782_v0 = vmul.f32 %v4290_v17, %v4286_v1 }
0x1cc2   :  { %3441 = vst.msk [vmem:[%s4970_s3] sm:$0xff] %vm2355_vm4, %v2782_v0 }
0x1cda   :  { %v3444_v18 = vpop.permute.xlu0 %3443 }
0x1cdb   :  { %3447 = vst.msk [vmem:[%s4970_s3] sm:$0xff] %vm3446_vm12, %v3444_v18 }
0x1d2d   :  { %v3351_v10 = vpop.f32.mrf.mxu0 }
0x1d2e   :  { %v3352_v48 = vadd.f32 %v3529_v20, %v3351_v10 }
0x1d2f   :  { %v4140_v55 = vpop.f32.mrf.mxu0 }
0x1d30   :  { %vm3355_vm13 = vcmp.gt.f32.partialorder %v3352_v48, 0.0  ;;  %v3356_v21 = vmul.f32 0.01, %v3352_v48 }
0x1d32   :  { %v3357_v22 = vsel %vm3355_vm13, %v3352_v48, %v3356_v21 }
0x1d33   :  { %4146 = vmatmul.mubr.msk.f32.vlgmr.msra.gmra.mxu0 %vm56_vm1, %v3357_v22 }
0x1df3   :  { %v3434_v19 = vpop.f32.mrf.mxu0 }
0x1df4   :  { %v3435_v24 = vadd.f32 %v3531_v23, %v3434_v19 }
0x1df5   :  { %v4147_v27 = vpop.f32.mrf.mxu0 }
0x1df6   :  { %v3438_v29 = vmul.f32 1.442695, %v3435_v24 }
0x1df8   :  { %4291 = vpow2.f32 %v3438_v29 }
0x1e05   :  { %v4292_v25 = vpop.eup %4291 }
0x1e06   :  { %3449 = vrot.lane.b32.xlu1 %v4292_v25, %s4338_s18 }
0x1e78   :  { %v3450_v32 = vpop.permute.xlu1 %3449 }
0x1e79   :  { %3453 = vst.msk [vmem:[%s4970_s3] sm:$0xff] %vm3452_vm14, %v3450_v32 }
0x1e7a   :  { %3458 = vsyncpa [#allocation3], 1 }

</bundles_post_ra>
